<compile_context>
chip_gen: v7x
topology: tpu7x:2x2x1
jax: 0.10.0
libtpu: 0.0.40
codegen_flags: <defaults>
</compile_context>

<pallas_src>
import functools

import jax
import jax.numpy as jnp
from jax.experimental import pallas as pl
from jax.experimental.pallas import tpu as pltpu


# ------------------------------ fused kernel ---------------------------------

def _layernorm(x, gamma, beta, eps=1e-5):
    mu = jnp.mean(x, axis=-1, keepdims=True)
    xc = x - mu
    var = jnp.mean(xc * xc, axis=-1, keepdims=True)
    return xc * jax.lax.rsqrt(var + eps) * gamma + beta


def _fused_kernel(x_ref, posb_ref, fc1w_ref,
                  wqkv_ref, bqkv_ref, woh_ref, bo_ref,
                  ln1g_ref, ln1b_ref,
                  wl1_ref, bl1_ref, wl2_ref, bl2_ref,
                  ln2g_ref, ln2b_ref,
                  fcw_ref, fcb_ref,
                  o_ref, *, nhead, num_layers):
    """One grid step == one batch element. x_ref/o_ref: (T, F); weights resident."""
    D = wqkv_ref.shape[1]
    Dh = D // nhead

    # fc1 with positional embedding + fc1 bias pre-folded into posb (T, D)
    h = jnp.dot(x_ref[...], fc1w_ref[...],
                preferred_element_type=jnp.float32) + posb_ref[...]

    # post-norm transformer encoder layers (nn.TransformerEncoderLayer, eval mode:
    # dropout layers are identity).  Static loop is fine at small num_layers.
    for l in range(num_layers):
        # fused QKV projection; 1/sqrt(Dh) already folded into the q columns
        qkv = jnp.dot(h, wqkv_ref[l],
                      preferred_element_type=jnp.float32) + bqkv_ref[l]   # (T, 3D)

        # attention: short static head loop, outputs accumulated straight into
        # the output projection (no concatenates, no transposes)
        attn = bo_ref[l]                                                  # (1, D)
        for hh in range(nhead):
            c = hh * Dh
            q = qkv[:, c:c + Dh]                                          # (T, Dh)
            k = qkv[:, D + c:D + c + Dh]
            v = qkv[:, 2 * D + c:2 * D + c + Dh]
            s = jax.lax.dot_general(                                      # (T, T)
                q, k, (((1,), (1,)), ((), ())),
                preferred_element_type=jnp.float32)
            s = s - jnp.max(s, axis=-1, keepdims=True)
            p = jnp.exp(s)
            p = p * pl.reciprocal(jnp.sum(p, axis=-1, keepdims=True), approx=True)
            o_h = jnp.dot(p, v, preferred_element_type=jnp.float32)       # (T, Dh)
            attn = attn + jnp.dot(o_h, woh_ref[l * nhead + hh],
                                  preferred_element_type=jnp.float32)     # (T, D)

        h = _layernorm(h + attn, ln1g_ref[l], ln1b_ref[l])

        # feed-forward (ReLU) + residual + LayerNorm
        f = jnp.dot(h, wl1_ref[l], preferred_element_type=jnp.float32) + bl1_ref[l]
        f = jnp.maximum(f, 0.0)
        f = jnp.dot(f, wl2_ref[l], preferred_element_type=jnp.float32) + bl2_ref[l]
        h = _layernorm(h + f, ln2g_ref[l], ln2b_ref[l])

    # fc: D -> F
    o_ref[...] = jnp.dot(h, fcw_ref[...],
                         preferred_element_type=jnp.float32) + fcb_ref[...]


# -------------------------------- wrapper -------------------------------------

def wind_enc_forward(x, params, *, nhead, num_layers):
    """x: (B, T, num_features) -> (B, T, num_features). Single fused pallas_call,
    grid over batch ("parallel"), all weights VMEM-resident across grid steps."""
    B, T, F = x.shape
    D = params["fc1_w"].shape[1]
    Dh = D // nhead
    x = x.astype(jnp.float32)

    # ---- one-time algebraic folds (tiny ops, fused under jit) ----
    # fc1(x + pos) == x @ W1 + (pos @ W1 + b1):  per-position bias, shape (T, D)
    pos_bias = params["pos_emb"][:T] @ params["fc1_w"] + params["fc1_b"]
    # fold the 1/sqrt(Dh) query scaling into the q-columns of the QKV projection
    qscale = jnp.concatenate([jnp.full((D,), Dh ** -0.5, jnp.float32),
                              jnp.ones((2 * D,), jnp.float32)])
    wqkv = params["wqkv"] * qscale[None, None, :]
    bqkv = params["bqkv"] * qscale[None, None, :]
    # output projection split per head: (L, D, D) -> (L*nhead, Dh, D)
    wo_h = params["wo"].reshape(num_layers * nhead, Dh, D)

    weight_args = [pos_bias, params["fc1_w"],
                   wqkv, bqkv, wo_h, params["bo"],
                   params["ln1_g"], params["ln1_b"],
                   params["wl1"], params["bl1"], params["wl2"], params["bl2"],
                   params["ln2_g"], params["ln2_b"],
                   params["fc_w"], params["fc_b"]]
    # weights: full-array blocks, constant index map -> fetched once, stay resident
    weight_specs = [pl.BlockSpec(a.shape, (lambda b, n=a.ndim: (0,) * n))
                    for a in weight_args]

    kernel = functools.partial(_fused_kernel, nhead=nhead, num_layers=num_layers)
    out = pl.pallas_call(
        kernel,
        out_shape=jax.ShapeDtypeStruct((B, T, F), jnp.float32),
        grid=(B,),
        in_specs=[pl.BlockSpec((None, T, F), lambda b: (b, 0, 0))] + weight_specs,
        out_specs=pl.BlockSpec((None, T, F), lambda b: (b, 0, 0)),
        compiler_params=pltpu.CompilerParams(
            dimension_semantics=("parallel",),
            vmem_limit_bytes=32 * 1024 * 1024),
    )(x, *weight_args)
    return out


# ------------------------------- param init -----------------------------------

def init_params(key, num_features, d_model, num_layers, dim_ff,
                max_len=5000, scale=0.05):
    """Weights stored pre-transposed as (in, out) == torch weight.T (no .T at runtime)."""
    ks = jax.random.split(key, 13)
    rnd = lambda k, shp: jax.random.normal(k, shp, jnp.float32) * scale
    L, D, F, Fw = num_layers, d_model, num_features, dim_ff
    return {
        "pos_emb": rnd(ks[0], (max_len, F)),               # nn.Embedding(5000, F).weight
        "fc1_w": rnd(ks[1], (F, D)), "fc1_b": rnd(ks[2], (1, D)),
        "wqkv": rnd(ks[3], (L, D, 3 * D)),                 # in_proj_weight.T per layer
        "bqkv": rnd(ks[4], (L, 1, 3 * D)),
        "wo": rnd(ks[5], (L, D, D)), "bo": rnd(ks[6], (L, 1, D)),
        "ln1_g": jnp.ones((L, 1, D), jnp.float32),
        "ln1_b": jnp.zeros((L, 1, D), jnp.float32),
        "wl1": rnd(ks[7], (L, D, Fw)), "bl1": rnd(ks[8], (L, 1, Fw)),
        "wl2": rnd(ks[9], (L, Fw, D)), "bl2": rnd(ks[10], (L, 1, D)),
        "ln2_g": jnp.ones((L, 1, D), jnp.float32),
        "ln2_b": jnp.zeros((L, 1, D), jnp.float32),
        "fc_w": rnd(ks[11], (D, F)), "fc_b": rnd(ks[12], (1, F)),
    }


# ---------------------------- pure-JAX reference -------------------------------

def _reference_forward(x, params, nhead, num_layers):
    B, T, F = x.shape
    D = params["fc1_w"].shape[1]
    Dh = D // nhead
    h = x + params["pos_emb"][:T][None]
    h = (h @ params["fc1_w"] + params["fc1_b"][0]).reshape(B * T, D)

    def ln(y, g, b):
        mu = y.mean(-1, keepdims=True)
        var = ((y - mu) ** 2).mean(-1, keepdims=True)
        return (y - mu) / jnp.sqrt(var + 1e-5) * g + b

    def split_heads(z):
        return z.reshape(B, T, nhead, Dh).transpose(0, 2, 1, 3)

    for l in range(num_layers):
        qkv = h @ params["wqkv"][l] + params["bqkv"][l]
        q = qkv[:, :D] / (Dh ** 0.5)
        k, v = qkv[:, D:2 * D], qkv[:, 2 * D:]
        s = jnp.einsum("bhqd,bhkd->bhqk", split_heads(q), split_heads(k))
        p = jax.nn.softmax(s, axis=-1)
        o = jnp.einsum("bhqk,bhkd->bhqd", p, split_heads(v))
        o = o.transpose(0, 2, 1, 3).reshape(B * T, D)
        o = o @ params["wo"][l] + params["bo"][l]
        h = ln(h + o, params["ln1_g"][l], params["ln1_b"][l])
        f = jax.nn.relu(h @ params["wl1"][l] + params["bl1"][l])
        f = f @ params["wl2"][l] + params["bl2"][l]
        h = ln(h + f, params["ln2_g"][l], params["ln2_b"][l])
    return (h @ params["fc_w"] + params["fc_b"][0]).reshape(B, T, F)


# ---------------------------------- main ---------------------------------------

if __name__ == "__main__":
    # small config consistent with GetWindEncByTransformer.forward
    B, T = 2, 8
    num_features = 64
    d_model, nhead, num_layers, dim_ff = 32, 4, 2, 64

    key = jax.random.PRNGKey(0)
    kx, kp = jax.random.split(key)
    x = jax.random.normal(kx, (B, T, num_features), jnp.float32)
    params = init_params(kp, num_features, d_model, num_layers, dim_ff)

    fwd = jax.jit(functools.partial(wind_enc_forward, nhead=nhead, num_layers=num_layers))
    out = jax.block_until_ready(fwd(x, params))

    assert out.shape == (B, T, num_features), out.shape
    assert out.dtype == jnp.float32

    ref = _reference_forward(x, params, nhead, num_layers)
    max_err = float(jnp.max(jnp.abs(out - ref)))
    assert jnp.allclose(out, ref, rtol=5e-2, atol=5e-2), max_err

    print("KERNEL_OK")
</pallas_src>

<mosaic_0001>
module attributes {stable_mosaic.version = 11 : i64} {
  func.func @_fused_kernel(%arg0: i32, %arg1: memref<1x8x64xf32, #tpu.memory_space<vmem>>, %arg2: memref<8x32xf32, #tpu.memory_space<vmem>>, %arg3: memref<64x32xf32, #tpu.memory_space<vmem>>, %arg4: memref<2x32x96xf32, #tpu.memory_space<vmem>>, %arg5: memref<2x1x96xf32, #tpu.memory_space<vmem>>, %arg6: memref<8x8x32xf32, #tpu.memory_space<vmem>>, %arg7: memref<2x1x32xf32, #tpu.memory_space<vmem>>, %arg8: memref<2x1x32xf32, #tpu.memory_space<vmem>>, %arg9: memref<2x1x32xf32, #tpu.memory_space<vmem>>, %arg10: memref<2x32x64xf32, #tpu.memory_space<vmem>>, %arg11: memref<2x1x64xf32, #tpu.memory_space<vmem>>, %arg12: memref<2x64x32xf32, #tpu.memory_space<vmem>>, %arg13: memref<2x1x32xf32, #tpu.memory_space<vmem>>, %arg14: memref<2x1x32xf32, #tpu.memory_space<vmem>>, %arg15: memref<2x1x32xf32, #tpu.memory_space<vmem>>, %arg16: memref<32x64xf32, #tpu.memory_space<vmem>>, %arg17: memref<1x64xf32, #tpu.memory_space<vmem>>, %arg18: memref<1x8x64xf32, #tpu.memory_space<vmem>>) attributes {dimension_semantics = [#tpu.dimension_semantics<parallel>], iteration_bounds = array<i64: 2>, scalar_prefetch = 0 : i64, scratch_operands = 0 : i64, tpu.core_type = #tpu.core_type<tc>, window_params = [{transform_indices = @transform_0, window_bounds = array<i64: 1, 8, 64>}, {pipeline_mode = #tpu.pipeline_mode<synchronous>, transform_indices = @transform_1, window_bounds = array<i64: 8, 32>}, {pipeline_mode = #tpu.pipeline_mode<synchronous>, transform_indices = @transform_2, window_bounds = array<i64: 64, 32>}, {pipeline_mode = #tpu.pipeline_mode<synchronous>, transform_indices = @transform_3, window_bounds = array<i64: 2, 32, 96>}, {pipeline_mode = #tpu.pipeline_mode<synchronous>, transform_indices = @transform_4, window_bounds = array<i64: 2, 1, 96>}, {pipeline_mode = #tpu.pipeline_mode<synchronous>, transform_indices = @transform_5, window_bounds = array<i64: 8, 8, 32>}, {pipeline_mode = #tpu.pipeline_mode<synchronous>, transform_indices = @transform_6, window_bounds = array<i64: 2, 1, 32>}, {pipeline_mode = #tpu.pipeline_mode<synchronous>, transform_indices = @transform_7, window_bounds = array<i64: 2, 1, 32>}, {pipeline_mode = #tpu.pipeline_mode<synchronous>, transform_indices = @transform_8, window_bounds = array<i64: 2, 1, 32>}, {pipeline_mode = #tpu.pipeline_mode<synchronous>, transform_indices = @transform_9, window_bounds = array<i64: 2, 32, 64>}, {pipeline_mode = #tpu.pipeline_mode<synchronous>, transform_indices = @transform_10, window_bounds = array<i64: 2, 1, 64>}, {pipeline_mode = #tpu.pipeline_mode<synchronous>, transform_indices = @transform_11, window_bounds = array<i64: 2, 64, 32>}, {pipeline_mode = #tpu.pipeline_mode<synchronous>, transform_indices = @transform_12, window_bounds = array<i64: 2, 1, 32>}, {pipeline_mode = #tpu.pipeline_mode<synchronous>, transform_indices = @transform_13, window_bounds = array<i64: 2, 1, 32>}, {pipeline_mode = #tpu.pipeline_mode<synchronous>, transform_indices = @transform_14, window_bounds = array<i64: 2, 1, 32>}, {pipeline_mode = #tpu.pipeline_mode<synchronous>, transform_indices = @transform_15, window_bounds = array<i64: 32, 64>}, {pipeline_mode = #tpu.pipeline_mode<synchronous>, transform_indices = @transform_16, window_bounds = array<i64: 1, 64>}, {transform_indices = @transform_17, window_bounds = array<i64: 1, 8, 64>}]} {
    %c0 = arith.constant 0 : index
    %c0_0 = arith.constant 0 : index
    %c0_1 = arith.constant 0 : index
    %0 = vector.load %arg1[%c0, %c0_0, %c0_1] : memref<1x8x64xf32, #tpu.memory_space<vmem>>, vector<1x8x64xf32>
    %1 = vector.shape_cast %0 : vector<1x8x64xf32> to vector<8x64xf32>
    %c0_2 = arith.constant 0 : index
    %c0_3 = arith.constant 0 : index
    %2 = vector.load %arg3[%c0_2, %c0_3] : memref<64x32xf32, #tpu.memory_space<vmem>>, vector<64x32xf32>
    %cst = arith.constant dense<0.000000e+00> : vector<8x32xf32>
    %3 = tpu.matmul %1, %2, %cst {dimension_numbers = #tpu.dot_dimension_numbers<[1], [0], [0], [1], [0, 0, 1, 1], [], []>} : vector<8x64xf32>, vector<64x32xf32>, vector<8x32xf32> -> vector<8x32xf32>
    %c0_4 = arith.constant 0 : index
    %c0_5 = arith.constant 0 : index
    %4 = vector.load %arg2[%c0_4, %c0_5] : memref<8x32xf32, #tpu.memory_space<vmem>>, vector<8x32xf32>
    %5 = arith.addf %3, %4 : vector<8x32xf32>
    %c0_6 = arith.constant 0 : index
    %c0_7 = arith.constant 0 : index
    %c0_8 = arith.constant 0 : index
    %6 = vector.load %arg4[%c0_6, %c0_7, %c0_8] : memref<2x32x96xf32, #tpu.memory_space<vmem>>, vector<1x32x96xf32>
    %7 = vector.shape_cast %6 : vector<1x32x96xf32> to vector<32x96xf32>
    %cst_9 = arith.constant dense<0.000000e+00> : vector<8x96xf32>
    %8 = tpu.matmul %5, %7, %cst_9 {dimension_numbers = #tpu.dot_dimension_numbers<[1], [0], [0], [1], [0, 0, 1, 1], [], []>} : vector<8x32xf32>, vector<32x96xf32>, vector<8x96xf32> -> vector<8x96xf32>
    %c0_10 = arith.constant 0 : index
    %c0_11 = arith.constant 0 : index
    %c0_12 = arith.constant 0 : index
    %9 = vector.load %arg5[%c0_10, %c0_11, %c0_12] : memref<2x1x96xf32, #tpu.memory_space<vmem>>, vector<1x1x96xf32>
    %10 = vector.shape_cast %9 : vector<1x1x96xf32> to vector<1x96xf32>
    %11 = vector.broadcast %10 : vector<1x96xf32> to vector<8x96xf32>
    %12 = arith.addf %8, %11 : vector<8x96xf32>
    %c0_13 = arith.constant 0 : index
    %c0_14 = arith.constant 0 : index
    %c0_15 = arith.constant 0 : index
    %13 = vector.load %arg7[%c0_13, %c0_14, %c0_15] : memref<2x1x32xf32, #tpu.memory_space<vmem>>, vector<1x1x32xf32>
    %14 = vector.shape_cast %13 : vector<1x1x32xf32> to vector<1x32xf32>
    %15 = vector.extract_strided_slice %12 {offsets = [0, 0], sizes = [8, 8], strides = [1, 1]} : vector<8x96xf32> to vector<8x8xf32>
    %16 = vector.extract_strided_slice %12 {offsets = [0, 32], sizes = [8, 8], strides = [1, 1]} : vector<8x96xf32> to vector<8x8xf32>
    %17 = vector.extract_strided_slice %12 {offsets = [0, 64], sizes = [8, 8], strides = [1, 1]} : vector<8x96xf32> to vector<8x8xf32>
    %cst_16 = arith.constant dense<0.000000e+00> : vector<8x8xf32>
    %18 = tpu.matmul %15, %16, %cst_16 {dimension_numbers = #tpu.dot_dimension_numbers<[1], [1], [0], [0], [0, 0, 1, 0], [], []>} : vector<8x8xf32>, vector<8x8xf32>, vector<8x8xf32> -> vector<8x8xf32>
    %cst_17 = arith.constant dense<0xFF800000> : vector<8xf32>
    %19 = vector.multi_reduction <maximumf>, %18, %cst_17 [1] : vector<8x8xf32> to vector<8xf32>
    %20 = vector.shape_cast %19 : vector<8xf32> to vector<8x1xf32>
    %21 = vector.broadcast %20 : vector<8x1xf32> to vector<8x8xf32>
    %22 = arith.subf %18, %21 : vector<8x8xf32>
    %23 = math.exp %22 : vector<8x8xf32>
    %cst_18 = arith.constant dense<0.000000e+00> : vector<8xf32>
    %24 = vector.multi_reduction <add>, %23, %cst_18 [1] : vector<8x8xf32> to vector<8xf32>
    %25 = vector.shape_cast %24 : vector<8xf32> to vector<8x1xf32>
    %26 = tpu.reciprocal %25 {approx = true} : vector<8x1xf32> -> vector<8x1xf32>
    %27 = vector.broadcast %26 : vector<8x1xf32> to vector<8x8xf32>
    %28 = arith.mulf %23, %27 : vector<8x8xf32>
    %cst_19 = arith.constant dense<0.000000e+00> : vector<8x8xf32>
    %29 = tpu.matmul %28, %17, %cst_19 {dimension_numbers = #tpu.dot_dimension_numbers<[1], [0], [0], [1], [0, 0, 1, 1], [], []>} : vector<8x8xf32>, vector<8x8xf32>, vector<8x8xf32> -> vector<8x8xf32>
    %c0_20 = arith.constant 0 : index
    %c0_21 = arith.constant 0 : index
    %c0_22 = arith.constant 0 : index
    %30 = vector.load %arg6[%c0_20, %c0_21, %c0_22] : memref<8x8x32xf32, #tpu.memory_space<vmem>>, vector<1x8x32xf32>
    %31 = vector.shape_cast %30 : vector<1x8x32xf32> to vector<8x32xf32>
    %cst_23 = arith.constant dense<0.000000e+00> : vector<8x32xf32>
    %32 = tpu.matmul %29, %31, %cst_23 {dimension_numbers = #tpu.dot_dimension_numbers<[1], [0], [0], [1], [0, 0, 1, 1], [], []>} : vector<8x8xf32>, vector<8x32xf32>, vector<8x32xf32> -> vector<8x32xf32>
    %33 = vector.broadcast %14 : vector<1x32xf32> to vector<8x32xf32>
    %34 = arith.addf %33, %32 : vector<8x32xf32>
    %35 = vector.extract_strided_slice %12 {offsets = [0, 8], sizes = [8, 8], strides = [1, 1]} : vector<8x96xf32> to vector<8x8xf32>
    %36 = vector.extract_strided_slice %12 {offsets = [0, 40], sizes = [8, 8], strides = [1, 1]} : vector<8x96xf32> to vector<8x8xf32>
    %37 = vector.extract_strided_slice %12 {offsets = [0, 72], sizes = [8, 8], strides = [1, 1]} : vector<8x96xf32> to vector<8x8xf32>
    %cst_24 = arith.constant dense<0.000000e+00> : vector<8x8xf32>
    %38 = tpu.matmul %35, %36, %cst_24 {dimension_numbers = #tpu.dot_dimension_numbers<[1], [1], [0], [0], [0, 0, 1, 0], [], []>} : vector<8x8xf32>, vector<8x8xf32>, vector<8x8xf32> -> vector<8x8xf32>
    %cst_25 = arith.constant dense<0xFF800000> : vector<8xf32>
    %39 = vector.multi_reduction <maximumf>, %38, %cst_25 [1] : vector<8x8xf32> to vector<8xf32>
    %40 = vector.shape_cast %39 : vector<8xf32> to vector<8x1xf32>
    %41 = vector.broadcast %40 : vector<8x1xf32> to vector<8x8xf32>
    %42 = arith.subf %38, %41 : vector<8x8xf32>
    %43 = math.exp %42 : vector<8x8xf32>
    %cst_26 = arith.constant dense<0.000000e+00> : vector<8xf32>
    %44 = vector.multi_reduction <add>, %43, %cst_26 [1] : vector<8x8xf32> to vector<8xf32>
    %45 = vector.shape_cast %44 : vector<8xf32> to vector<8x1xf32>
    %46 = tpu.reciprocal %45 {approx = true} : vector<8x1xf32> -> vector<8x1xf32>
    %47 = vector.broadcast %46 : vector<8x1xf32> to vector<8x8xf32>
    %48 = arith.mulf %43, %47 : vector<8x8xf32>
    %cst_27 = arith.constant dense<0.000000e+00> : vector<8x8xf32>
    %49 = tpu.matmul %48, %37, %cst_27 {dimension_numbers = #tpu.dot_dimension_numbers<[1], [0], [0], [1], [0, 0, 1, 1], [], []>} : vector<8x8xf32>, vector<8x8xf32>, vector<8x8xf32> -> vector<8x8xf32>
    %c1 = arith.constant 1 : index
    %c0_28 = arith.constant 0 : index
    %c0_29 = arith.constant 0 : index
    %50 = vector.load %arg6[%c1, %c0_28, %c0_29] : memref<8x8x32xf32, #tpu.memory_space<vmem>>, vector<1x8x32xf32>
    %51 = vector.shape_cast %50 : vector<1x8x32xf32> to vector<8x32xf32>
    %cst_30 = arith.constant dense<0.000000e+00> : vector<8x32xf32>
    %52 = tpu.matmul %49, %51, %cst_30 {dimension_numbers = #tpu.dot_dimension_numbers<[1], [0], [0], [1], [0, 0, 1, 1], [], []>} : vector<8x8xf32>, vector<8x32xf32>, vector<8x32xf32> -> vector<8x32xf32>
    %53 = arith.addf %34, %52 : vector<8x32xf32>
    %54 = vector.extract_strided_slice %12 {offsets = [0, 16], sizes = [8, 8], strides = [1, 1]} : vector<8x96xf32> to vector<8x8xf32>
    %55 = vector.extract_strided_slice %12 {offsets = [0, 48], sizes = [8, 8], strides = [1, 1]} : vector<8x96xf32> to vector<8x8xf32>
    %56 = vector.extract_strided_slice %12 {offsets = [0, 80], sizes = [8, 8], strides = [1, 1]} : vector<8x96xf32> to vector<8x8xf32>
    %cst_31 = arith.constant dense<0.000000e+00> : vector<8x8xf32>
    %57 = tpu.matmul %54, %55, %cst_31 {dimension_numbers = #tpu.dot_dimension_numbers<[1], [1], [0], [0], [0, 0, 1, 0], [], []>} : vector<8x8xf32>, vector<8x8xf32>, vector<8x8xf32> -> vector<8x8xf32>
    %cst_32 = arith.constant dense<0xFF800000> : vector<8xf32>
    %58 = vector.multi_reduction <maximumf>, %57, %cst_32 [1] : vector<8x8xf32> to vector<8xf32>
    %59 = vector.shape_cast %58 : vector<8xf32> to vector<8x1xf32>
    %60 = vector.broadcast %59 : vector<8x1xf32> to vector<8x8xf32>
    %61 = arith.subf %57, %60 : vector<8x8xf32>
    %62 = math.exp %61 : vector<8x8xf32>
    %cst_33 = arith.constant dense<0.000000e+00> : vector<8xf32>
    %63 = vector.multi_reduction <add>, %62, %cst_33 [1] : vector<8x8xf32> to vector<8xf32>
    %64 = vector.shape_cast %63 : vector<8xf32> to vector<8x1xf32>
    %65 = tpu.reciprocal %64 {approx = true} : vector<8x1xf32> -> vector<8x1xf32>
    %66 = vector.broadcast %65 : vector<8x1xf32> to vector<8x8xf32>
    %67 = arith.mulf %62, %66 : vector<8x8xf32>
    %cst_34 = arith.constant dense<0.000000e+00> : vector<8x8xf32>
    %68 = tpu.matmul %67, %56, %cst_34 {dimension_numbers = #tpu.dot_dimension_numbers<[1], [0], [0], [1], [0, 0, 1, 1], [], []>} : vector<8x8xf32>, vector<8x8xf32>, vector<8x8xf32> -> vector<8x8xf32>
    %c2 = arith.constant 2 : index
    %c0_35 = arith.constant 0 : index
    %c0_36 = arith.constant 0 : index
    %69 = vector.load %arg6[%c2, %c0_35, %c0_36] : memref<8x8x32xf32, #tpu.memory_space<vmem>>, vector<1x8x32xf32>
    %70 = vector.shape_cast %69 : vector<1x8x32xf32> to vector<8x32xf32>
    %cst_37 = arith.constant dense<0.000000e+00> : vector<8x32xf32>
    %71 = tpu.matmul %68, %70, %cst_37 {dimension_numbers = #tpu.dot_dimension_numbers<[1], [0], [0], [1], [0, 0, 1, 1], [], []>} : vector<8x8xf32>, vector<8x32xf32>, vector<8x32xf32> -> vector<8x32xf32>
    %72 = arith.addf %53, %71 : vector<8x32xf32>
    %73 = vector.extract_strided_slice %12 {offsets = [0, 24], sizes = [8, 8], strides = [1, 1]} : vector<8x96xf32> to vector<8x8xf32>
    %74 = vector.extract_strided_slice %12 {offsets = [0, 56], sizes = [8, 8], strides = [1, 1]} : vector<8x96xf32> to vector<8x8xf32>
    %75 = vector.extract_strided_slice %12 {offsets = [0, 88], sizes = [8, 8], strides = [1, 1]} : vector<8x96xf32> to vector<8x8xf32>
    %cst_38 = arith.constant dense<0.000000e+00> : vector<8x8xf32>
    %76 = tpu.matmul %73, %74, %cst_38 {dimension_numbers = #tpu.dot_dimension_numbers<[1], [1], [0], [0], [0, 0, 1, 0], [], []>} : vector<8x8xf32>, vector<8x8xf32>, vector<8x8xf32> -> vector<8x8xf32>
    %cst_39 = arith.constant dense<0xFF800000> : vector<8xf32>
    %77 = vector.multi_reduction <maximumf>, %76, %cst_39 [1] : vector<8x8xf32> to vector<8xf32>
    %78 = vector.shape_cast %77 : vector<8xf32> to vector<8x1xf32>
    %79 = vector.broadcast %78 : vector<8x1xf32> to vector<8x8xf32>
    %80 = arith.subf %76, %79 : vector<8x8xf32>
    %81 = math.exp %80 : vector<8x8xf32>
    %cst_40 = arith.constant dense<0.000000e+00> : vector<8xf32>
    %82 = vector.multi_reduction <add>, %81, %cst_40 [1] : vector<8x8xf32> to vector<8xf32>
    %83 = vector.shape_cast %82 : vector<8xf32> to vector<8x1xf32>
    %84 = tpu.reciprocal %83 {approx = true} : vector<8x1xf32> -> vector<8x1xf32>
    %85 = vector.broadcast %84 : vector<8x1xf32> to vector<8x8xf32>
    %86 = arith.mulf %81, %85 : vector<8x8xf32>
    %cst_41 = arith.constant dense<0.000000e+00> : vector<8x8xf32>
    %87 = tpu.matmul %86, %75, %cst_41 {dimension_numbers = #tpu.dot_dimension_numbers<[1], [0], [0], [1], [0, 0, 1, 1], [], []>} : vector<8x8xf32>, vector<8x8xf32>, vector<8x8xf32> -> vector<8x8xf32>
    %c3 = arith.constant 3 : index
    %c0_42 = arith.constant 0 : index
    %c0_43 = arith.constant 0 : index
    %88 = vector.load %arg6[%c3, %c0_42, %c0_43] : memref<8x8x32xf32, #tpu.memory_space<vmem>>, vector<1x8x32xf32>
    %89 = vector.shape_cast %88 : vector<1x8x32xf32> to vector<8x32xf32>
    %cst_44 = arith.constant dense<0.000000e+00> : vector<8x32xf32>
    %90 = tpu.matmul %87, %89, %cst_44 {dimension_numbers = #tpu.dot_dimension_numbers<[1], [0], [0], [1], [0, 0, 1, 1], [], []>} : vector<8x8xf32>, vector<8x32xf32>, vector<8x32xf32> -> vector<8x32xf32>
    %91 = arith.addf %72, %90 : vector<8x32xf32>
    %92 = arith.addf %5, %91 : vector<8x32xf32>
    %c0_45 = arith.constant 0 : index
    %c0_46 = arith.constant 0 : index
    %c0_47 = arith.constant 0 : index
    %93 = vector.load %arg8[%c0_45, %c0_46, %c0_47] : memref<2x1x32xf32, #tpu.memory_space<vmem>>, vector<1x1x32xf32>
    %94 = vector.shape_cast %93 : vector<1x1x32xf32> to vector<1x32xf32>
    %c0_48 = arith.constant 0 : index
    %c0_49 = arith.constant 0 : index
    %c0_50 = arith.constant 0 : index
    %95 = vector.load %arg9[%c0_48, %c0_49, %c0_50] : memref<2x1x32xf32, #tpu.memory_space<vmem>>, vector<1x1x32xf32>
    %96 = vector.shape_cast %95 : vector<1x1x32xf32> to vector<1x32xf32>
    %cst_51 = arith.constant dense<0.000000e+00> : vector<8xf32>
    %97 = vector.multi_reduction <add>, %92, %cst_51 [1] : vector<8x32xf32> to vector<8xf32>
    %98 = vector.shape_cast %97 : vector<8xf32> to vector<8x1xf32>
    %cst_52 = arith.constant 3.200000e+01 : f32
    %99 = vector.broadcast %cst_52 : f32 to vector<8x1xf32>
    %100 = arith.divf %98, %99 : vector<8x1xf32>
    %101 = vector.broadcast %100 : vector<8x1xf32> to vector<8x32xf32>
    %102 = arith.subf %92, %101 : vector<8x32xf32>
    %103 = arith.mulf %102, %102 : vector<8x32xf32>
    %cst_53 = arith.constant dense<0.000000e+00> : vector<8xf32>
    %104 = vector.multi_reduction <add>, %103, %cst_53 [1] : vector<8x32xf32> to vector<8xf32>
    %105 = vector.shape_cast %104 : vector<8xf32> to vector<8x1xf32>
    %cst_54 = arith.constant 3.200000e+01 : f32
    %106 = vector.broadcast %cst_54 : f32 to vector<8x1xf32>
    %107 = arith.divf %105, %106 : vector<8x1xf32>
    %cst_55 = arith.constant 9.99999974E-6 : f32
    %108 = vector.broadcast %cst_55 : f32 to vector<8x1xf32>
    %109 = arith.addf %107, %108 : vector<8x1xf32>
    %110 = math.rsqrt %109 : vector<8x1xf32>
    %111 = vector.broadcast %110 : vector<8x1xf32> to vector<8x32xf32>
    %112 = arith.mulf %102, %111 : vector<8x32xf32>
    %113 = vector.broadcast %94 : vector<1x32xf32> to vector<8x32xf32>
    %114 = arith.mulf %112, %113 : vector<8x32xf32>
    %115 = vector.broadcast %96 : vector<1x32xf32> to vector<8x32xf32>
    %116 = arith.addf %114, %115 : vector<8x32xf32>
    %c0_56 = arith.constant 0 : index
    %c0_57 = arith.constant 0 : index
    %c0_58 = arith.constant 0 : index
    %117 = vector.load %arg10[%c0_56, %c0_57, %c0_58] : memref<2x32x64xf32, #tpu.memory_space<vmem>>, vector<1x32x64xf32>
    %118 = vector.shape_cast %117 : vector<1x32x64xf32> to vector<32x64xf32>
    %cst_59 = arith.constant dense<0.000000e+00> : vector<8x64xf32>
    %119 = tpu.matmul %116, %118, %cst_59 {dimension_numbers = #tpu.dot_dimension_numbers<[1], [0], [0], [1], [0, 0, 1, 1], [], []>} : vector<8x32xf32>, vector<32x64xf32>, vector<8x64xf32> -> vector<8x64xf32>
    %c0_60 = arith.constant 0 : index
    %c0_61 = arith.constant 0 : index
    %c0_62 = arith.constant 0 : index
    %120 = vector.load %arg11[%c0_60, %c0_61, %c0_62] : memref<2x1x64xf32, #tpu.memory_space<vmem>>, vector<1x1x64xf32>
    %121 = vector.shape_cast %120 : vector<1x1x64xf32> to vector<1x64xf32>
    %122 = vector.broadcast %121 : vector<1x64xf32> to vector<8x64xf32>
    %123 = arith.addf %119, %122 : vector<8x64xf32>
    %cst_63 = arith.constant 0.000000e+00 : f32
    %124 = vector.broadcast %cst_63 : f32 to vector<8x64xf32>
    %125 = arith.maximumf %123, %124 : vector<8x64xf32>
    %c0_64 = arith.constant 0 : index
    %c0_65 = arith.constant 0 : index
    %c0_66 = arith.constant 0 : index
    %126 = vector.load %arg12[%c0_64, %c0_65, %c0_66] : memref<2x64x32xf32, #tpu.memory_space<vmem>>, vector<1x64x32xf32>
    %127 = vector.shape_cast %126 : vector<1x64x32xf32> to vector<64x32xf32>
    %cst_67 = arith.constant dense<0.000000e+00> : vector<8x32xf32>
    %128 = tpu.matmul %125, %127, %cst_67 {dimension_numbers = #tpu.dot_dimension_numbers<[1], [0], [0], [1], [0, 0, 1, 1], [], []>} : vector<8x64xf32>, vector<64x32xf32>, vector<8x32xf32> -> vector<8x32xf32>
    %c0_68 = arith.constant 0 : index
    %c0_69 = arith.constant 0 : index
    %c0_70 = arith.constant 0 : index
    %129 = vector.load %arg13[%c0_68, %c0_69, %c0_70] : memref<2x1x32xf32, #tpu.memory_space<vmem>>, vector<1x1x32xf32>
    %130 = vector.shape_cast %129 : vector<1x1x32xf32> to vector<1x32xf32>
    %131 = vector.broadcast %130 : vector<1x32xf32> to vector<8x32xf32>
    %132 = arith.addf %128, %131 : vector<8x32xf32>
    %133 = arith.addf %116, %132 : vector<8x32xf32>
    %c0_71 = arith.constant 0 : index
    %c0_72 = arith.constant 0 : index
    %c0_73 = arith.constant 0 : index
    %134 = vector.load %arg14[%c0_71, %c0_72, %c0_73] : memref<2x1x32xf32, #tpu.memory_space<vmem>>, vector<1x1x32xf32>
    %135 = vector.shape_cast %134 : vector<1x1x32xf32> to vector<1x32xf32>
    %c0_74 = arith.constant 0 : index
    %c0_75 = arith.constant 0 : index
    %c0_76 = arith.constant 0 : index
    %136 = vector.load %arg15[%c0_74, %c0_75, %c0_76] : memref<2x1x32xf32, #tpu.memory_space<vmem>>, vector<1x1x32xf32>
    %137 = vector.shape_cast %136 : vector<1x1x32xf32> to vector<1x32xf32>
    %cst_77 = arith.constant dense<0.000000e+00> : vector<8xf32>
    %138 = vector.multi_reduction <add>, %133, %cst_77 [1] : vector<8x32xf32> to vector<8xf32>
    %139 = vector.shape_cast %138 : vector<8xf32> to vector<8x1xf32>
    %cst_78 = arith.constant 3.200000e+01 : f32
    %140 = vector.broadcast %cst_78 : f32 to vector<8x1xf32>
    %141 = arith.divf %139, %140 : vector<8x1xf32>
    %142 = vector.broadcast %141 : vector<8x1xf32> to vector<8x32xf32>
    %143 = arith.subf %133, %142 : vector<8x32xf32>
    %144 = arith.mulf %143, %143 : vector<8x32xf32>
    %cst_79 = arith.constant dense<0.000000e+00> : vector<8xf32>
    %145 = vector.multi_reduction <add>, %144, %cst_79 [1] : vector<8x32xf32> to vector<8xf32>
    %146 = vector.shape_cast %145 : vector<8xf32> to vector<8x1xf32>
    %cst_80 = arith.constant 3.200000e+01 : f32
    %147 = vector.broadcast %cst_80 : f32 to vector<8x1xf32>
    %148 = arith.divf %146, %147 : vector<8x1xf32>
    %cst_81 = arith.constant 9.99999974E-6 : f32
    %149 = vector.broadcast %cst_81 : f32 to vector<8x1xf32>
    %150 = arith.addf %148, %149 : vector<8x1xf32>
    %151 = math.rsqrt %150 : vector<8x1xf32>
    %152 = vector.broadcast %151 : vector<8x1xf32> to vector<8x32xf32>
    %153 = arith.mulf %143, %152 : vector<8x32xf32>
    %154 = vector.broadcast %135 : vector<1x32xf32> to vector<8x32xf32>
    %155 = arith.mulf %153, %154 : vector<8x32xf32>
    %156 = vector.broadcast %137 : vector<1x32xf32> to vector<8x32xf32>
    %157 = arith.addf %155, %156 : vector<8x32xf32>
    %c1_82 = arith.constant 1 : index
    %c0_83 = arith.constant 0 : index
    %c0_84 = arith.constant 0 : index
    %158 = vector.load %arg4[%c1_82, %c0_83, %c0_84] : memref<2x32x96xf32, #tpu.memory_space<vmem>>, vector<1x32x96xf32>
    %159 = vector.shape_cast %158 : vector<1x32x96xf32> to vector<32x96xf32>
    %cst_85 = arith.constant dense<0.000000e+00> : vector<8x96xf32>
    %160 = tpu.matmul %157, %159, %cst_85 {dimension_numbers = #tpu.dot_dimension_numbers<[1], [0], [0], [1], [0, 0, 1, 1], [], []>} : vector<8x32xf32>, vector<32x96xf32>, vector<8x96xf32> -> vector<8x96xf32>
    %c1_86 = arith.constant 1 : index
    %c0_87 = arith.constant 0 : index
    %c0_88 = arith.constant 0 : index
    %161 = vector.load %arg5[%c1_86, %c0_87, %c0_88] : memref<2x1x96xf32, #tpu.memory_space<vmem>>, vector<1x1x96xf32>
    %162 = vector.shape_cast %161 : vector<1x1x96xf32> to vector<1x96xf32>
    %163 = vector.broadcast %162 : vector<1x96xf32> to vector<8x96xf32>
    %164 = arith.addf %160, %163 : vector<8x96xf32>
    %c1_89 = arith.constant 1 : index
    %c0_90 = arith.constant 0 : index
    %c0_91 = arith.constant 0 : index
    %165 = vector.load %arg7[%c1_89, %c0_90, %c0_91] : memref<2x1x32xf32, #tpu.memory_space<vmem>>, vector<1x1x32xf32>
    %166 = vector.shape_cast %165 : vector<1x1x32xf32> to vector<1x32xf32>
    %167 = vector.extract_strided_slice %164 {offsets = [0, 0], sizes = [8, 8], strides = [1, 1]} : vector<8x96xf32> to vector<8x8xf32>
    %168 = vector.extract_strided_slice %164 {offsets = [0, 32], sizes = [8, 8], strides = [1, 1]} : vector<8x96xf32> to vector<8x8xf32>
    %169 = vector.extract_strided_slice %164 {offsets = [0, 64], sizes = [8, 8], strides = [1, 1]} : vector<8x96xf32> to vector<8x8xf32>
    %cst_92 = arith.constant dense<0.000000e+00> : vector<8x8xf32>
    %170 = tpu.matmul %167, %168, %cst_92 {dimension_numbers = #tpu.dot_dimension_numbers<[1], [1], [0], [0], [0, 0, 1, 0], [], []>} : vector<8x8xf32>, vector<8x8xf32>, vector<8x8xf32> -> vector<8x8xf32>
    %cst_93 = arith.constant dense<0xFF800000> : vector<8xf32>
    %171 = vector.multi_reduction <maximumf>, %170, %cst_93 [1] : vector<8x8xf32> to vector<8xf32>
    %172 = vector.shape_cast %171 : vector<8xf32> to vector<8x1xf32>
    %173 = vector.broadcast %172 : vector<8x1xf32> to vector<8x8xf32>
    %174 = arith.subf %170, %173 : vector<8x8xf32>
    %175 = math.exp %174 : vector<8x8xf32>
    %cst_94 = arith.constant dense<0.000000e+00> : vector<8xf32>
    %176 = vector.multi_reduction <add>, %175, %cst_94 [1] : vector<8x8xf32> to vector<8xf32>
    %177 = vector.shape_cast %176 : vector<8xf32> to vector<8x1xf32>
    %178 = tpu.reciprocal %177 {approx = true} : vector<8x1xf32> -> vector<8x1xf32>
    %179 = vector.broadcast %178 : vector<8x1xf32> to vector<8x8xf32>
    %180 = arith.mulf %175, %179 : vector<8x8xf32>
    %cst_95 = arith.constant dense<0.000000e+00> : vector<8x8xf32>
    %181 = tpu.matmul %180, %169, %cst_95 {dimension_numbers = #tpu.dot_dimension_numbers<[1], [0], [0], [1], [0, 0, 1, 1], [], []>} : vector<8x8xf32>, vector<8x8xf32>, vector<8x8xf32> -> vector<8x8xf32>
    %c4 = arith.constant 4 : index
    %c0_96 = arith.constant 0 : index
    %c0_97 = arith.constant 0 : index
    %182 = vector.load %arg6[%c4, %c0_96, %c0_97] : memref<8x8x32xf32, #tpu.memory_space<vmem>>, vector<1x8x32xf32>
    %183 = vector.shape_cast %182 : vector<1x8x32xf32> to vector<8x32xf32>
    %cst_98 = arith.constant dense<0.000000e+00> : vector<8x32xf32>
    %184 = tpu.matmul %181, %183, %cst_98 {dimension_numbers = #tpu.dot_dimension_numbers<[1], [0], [0], [1], [0, 0, 1, 1], [], []>} : vector<8x8xf32>, vector<8x32xf32>, vector<8x32xf32> -> vector<8x32xf32>
    %185 = vector.broadcast %166 : vector<1x32xf32> to vector<8x32xf32>
    %186 = arith.addf %185, %184 : vector<8x32xf32>
    %187 = vector.extract_strided_slice %164 {offsets = [0, 8], sizes = [8, 8], strides = [1, 1]} : vector<8x96xf32> to vector<8x8xf32>
    %188 = vector.extract_strided_slice %164 {offsets = [0, 40], sizes = [8, 8], strides = [1, 1]} : vector<8x96xf32> to vector<8x8xf32>
    %189 = vector.extract_strided_slice %164 {offsets = [0, 72], sizes = [8, 8], strides = [1, 1]} : vector<8x96xf32> to vector<8x8xf32>
    %cst_99 = arith.constant dense<0.000000e+00> : vector<8x8xf32>
    %190 = tpu.matmul %187, %188, %cst_99 {dimension_numbers = #tpu.dot_dimension_numbers<[1], [1], [0], [0], [0, 0, 1, 0], [], []>} : vector<8x8xf32>, vector<8x8xf32>, vector<8x8xf32> -> vector<8x8xf32>
    %cst_100 = arith.constant dense<0xFF800000> : vector<8xf32>
    %191 = vector.multi_reduction <maximumf>, %190, %cst_100 [1] : vector<8x8xf32> to vector<8xf32>
    %192 = vector.shape_cast %191 : vector<8xf32> to vector<8x1xf32>
    %193 = vector.broadcast %192 : vector<8x1xf32> to vector<8x8xf32>
    %194 = arith.subf %190, %193 : vector<8x8xf32>
    %195 = math.exp %194 : vector<8x8xf32>
    %cst_101 = arith.constant dense<0.000000e+00> : vector<8xf32>
    %196 = vector.multi_reduction <add>, %195, %cst_101 [1] : vector<8x8xf32> to vector<8xf32>
    %197 = vector.shape_cast %196 : vector<8xf32> to vector<8x1xf32>
    %198 = tpu.reciprocal %197 {approx = true} : vector<8x1xf32> -> vector<8x1xf32>
    %199 = vector.broadcast %198 : vector<8x1xf32> to vector<8x8xf32>
    %200 = arith.mulf %195, %199 : vector<8x8xf32>
    %cst_102 = arith.constant dense<0.000000e+00> : vector<8x8xf32>
    %201 = tpu.matmul %200, %189, %cst_102 {dimension_numbers = #tpu.dot_dimension_numbers<[1], [0], [0], [1], [0, 0, 1, 1], [], []>} : vector<8x8xf32>, vector<8x8xf32>, vector<8x8xf32> -> vector<8x8xf32>
    %c5 = arith.constant 5 : index
    %c0_103 = arith.constant 0 : index
    %c0_104 = arith.constant 0 : index
    %202 = vector.load %arg6[%c5, %c0_103, %c0_104] : memref<8x8x32xf32, #tpu.memory_space<vmem>>, vector<1x8x32xf32>
    %203 = vector.shape_cast %202 : vector<1x8x32xf32> to vector<8x32xf32>
    %cst_105 = arith.constant dense<0.000000e+00> : vector<8x32xf32>
    %204 = tpu.matmul %201, %203, %cst_105 {dimension_numbers = #tpu.dot_dimension_numbers<[1], [0], [0], [1], [0, 0, 1, 1], [], []>} : vector<8x8xf32>, vector<8x32xf32>, vector<8x32xf32> -> vector<8x32xf32>
    %205 = arith.addf %186, %204 : vector<8x32xf32>
    %206 = vector.extract_strided_slice %164 {offsets = [0, 16], sizes = [8, 8], strides = [1, 1]} : vector<8x96xf32> to vector<8x8xf32>
    %207 = vector.extract_strided_slice %164 {offsets = [0, 48], sizes = [8, 8], strides = [1, 1]} : vector<8x96xf32> to vector<8x8xf32>
    %208 = vector.extract_strided_slice %164 {offsets = [0, 80], sizes = [8, 8], strides = [1, 1]} : vector<8x96xf32> to vector<8x8xf32>
    %cst_106 = arith.constant dense<0.000000e+00> : vector<8x8xf32>
    %209 = tpu.matmul %206, %207, %cst_106 {dimension_numbers = #tpu.dot_dimension_numbers<[1], [1], [0], [0], [0, 0, 1, 0], [], []>} : vector<8x8xf32>, vector<8x8xf32>, vector<8x8xf32> -> vector<8x8xf32>
    %cst_107 = arith.constant dense<0xFF800000> : vector<8xf32>
    %210 = vector.multi_reduction <maximumf>, %209, %cst_107 [1] : vector<8x8xf32> to vector<8xf32>
    %211 = vector.shape_cast %210 : vector<8xf32> to vector<8x1xf32>
    %212 = vector.broadcast %211 : vector<8x1xf32> to vector<8x8xf32>
    %213 = arith.subf %209, %212 : vector<8x8xf32>
    %214 = math.exp %213 : vector<8x8xf32>
    %cst_108 = arith.constant dense<0.000000e+00> : vector<8xf32>
    %215 = vector.multi_reduction <add>, %214, %cst_108 [1] : vector<8x8xf32> to vector<8xf32>
    %216 = vector.shape_cast %215 : vector<8xf32> to vector<8x1xf32>
    %217 = tpu.reciprocal %216 {approx = true} : vector<8x1xf32> -> vector<8x1xf32>
    %218 = vector.broadcast %217 : vector<8x1xf32> to vector<8x8xf32>
    %219 = arith.mulf %214, %218 : vector<8x8xf32>
    %cst_109 = arith.constant dense<0.000000e+00> : vector<8x8xf32>
    %220 = tpu.matmul %219, %208, %cst_109 {dimension_numbers = #tpu.dot_dimension_numbers<[1], [0], [0], [1], [0, 0, 1, 1], [], []>} : vector<8x8xf32>, vector<8x8xf32>, vector<8x8xf32> -> vector<8x8xf32>
    %c6 = arith.constant 6 : index
    %c0_110 = arith.constant 0 : index
    %c0_111 = arith.constant 0 : index
    %221 = vector.load %arg6[%c6, %c0_110, %c0_111] : memref<8x8x32xf32, #tpu.memory_space<vmem>>, vector<1x8x32xf32>
    %222 = vector.shape_cast %221 : vector<1x8x32xf32> to vector<8x32xf32>
    %cst_112 = arith.constant dense<0.000000e+00> : vector<8x32xf32>
    %223 = tpu.matmul %220, %222, %cst_112 {dimension_numbers = #tpu.dot_dimension_numbers<[1], [0], [0], [1], [0, 0, 1, 1], [], []>} : vector<8x8xf32>, vector<8x32xf32>, vector<8x32xf32> -> vector<8x32xf32>
    %224 = arith.addf %205, %223 : vector<8x32xf32>
    %225 = vector.extract_strided_slice %164 {offsets = [0, 24], sizes = [8, 8], strides = [1, 1]} : vector<8x96xf32> to vector<8x8xf32>
    %226 = vector.extract_strided_slice %164 {offsets = [0, 56], sizes = [8, 8], strides = [1, 1]} : vector<8x96xf32> to vector<8x8xf32>
    %227 = vector.extract_strided_slice %164 {offsets = [0, 88], sizes = [8, 8], strides = [1, 1]} : vector<8x96xf32> to vector<8x8xf32>
    %cst_113 = arith.constant dense<0.000000e+00> : vector<8x8xf32>
    %228 = tpu.matmul %225, %226, %cst_113 {dimension_numbers = #tpu.dot_dimension_numbers<[1], [1], [0], [0], [0, 0, 1, 0], [], []>} : vector<8x8xf32>, vector<8x8xf32>, vector<8x8xf32> -> vector<8x8xf32>
    %cst_114 = arith.constant dense<0xFF800000> : vector<8xf32>
    %229 = vector.multi_reduction <maximumf>, %228, %cst_114 [1] : vector<8x8xf32> to vector<8xf32>
    %230 = vector.shape_cast %229 : vector<8xf32> to vector<8x1xf32>
    %231 = vector.broadcast %230 : vector<8x1xf32> to vector<8x8xf32>
    %232 = arith.subf %228, %231 : vector<8x8xf32>
    %233 = math.exp %232 : vector<8x8xf32>
    %cst_115 = arith.constant dense<0.000000e+00> : vector<8xf32>
    %234 = vector.multi_reduction <add>, %233, %cst_115 [1] : vector<8x8xf32> to vector<8xf32>
    %235 = vector.shape_cast %234 : vector<8xf32> to vector<8x1xf32>
    %236 = tpu.reciprocal %235 {approx = true} : vector<8x1xf32> -> vector<8x1xf32>
    %237 = vector.broadcast %236 : vector<8x1xf32> to vector<8x8xf32>
    %238 = arith.mulf %233, %237 : vector<8x8xf32>
    %cst_116 = arith.constant dense<0.000000e+00> : vector<8x8xf32>
    %239 = tpu.matmul %238, %227, %cst_116 {dimension_numbers = #tpu.dot_dimension_numbers<[1], [0], [0], [1], [0, 0, 1, 1], [], []>} : vector<8x8xf32>, vector<8x8xf32>, vector<8x8xf32> -> vector<8x8xf32>
    %c7 = arith.constant 7 : index
    %c0_117 = arith.constant 0 : index
    %c0_118 = arith.constant 0 : index
    %240 = vector.load %arg6[%c7, %c0_117, %c0_118] : memref<8x8x32xf32, #tpu.memory_space<vmem>>, vector<1x8x32xf32>
    %241 = vector.shape_cast %240 : vector<1x8x32xf32> to vector<8x32xf32>
    %cst_119 = arith.constant dense<0.000000e+00> : vector<8x32xf32>
    %242 = tpu.matmul %239, %241, %cst_119 {dimension_numbers = #tpu.dot_dimension_numbers<[1], [0], [0], [1], [0, 0, 1, 1], [], []>} : vector<8x8xf32>, vector<8x32xf32>, vector<8x32xf32> -> vector<8x32xf32>
    %243 = arith.addf %224, %242 : vector<8x32xf32>
    %244 = arith.addf %157, %243 : vector<8x32xf32>
    %c1_120 = arith.constant 1 : index
    %c0_121 = arith.constant 0 : index
    %c0_122 = arith.constant 0 : index
    %245 = vector.load %arg8[%c1_120, %c0_121, %c0_122] : memref<2x1x32xf32, #tpu.memory_space<vmem>>, vector<1x1x32xf32>
    %246 = vector.shape_cast %245 : vector<1x1x32xf32> to vector<1x32xf32>
    %c1_123 = arith.constant 1 : index
    %c0_124 = arith.constant 0 : index
    %c0_125 = arith.constant 0 : index
    %247 = vector.load %arg9[%c1_123, %c0_124, %c0_125] : memref<2x1x32xf32, #tpu.memory_space<vmem>>, vector<1x1x32xf32>
    %248 = vector.shape_cast %247 : vector<1x1x32xf32> to vector<1x32xf32>
    %cst_126 = arith.constant dense<0.000000e+00> : vector<8xf32>
    %249 = vector.multi_reduction <add>, %244, %cst_126 [1] : vector<8x32xf32> to vector<8xf32>
    %250 = vector.shape_cast %249 : vector<8xf32> to vector<8x1xf32>
    %cst_127 = arith.constant 3.200000e+01 : f32
    %251 = vector.broadcast %cst_127 : f32 to vector<8x1xf32>
    %252 = arith.divf %250, %251 : vector<8x1xf32>
    %253 = vector.broadcast %252 : vector<8x1xf32> to vector<8x32xf32>
    %254 = arith.subf %244, %253 : vector<8x32xf32>
    %255 = arith.mulf %254, %254 : vector<8x32xf32>
    %cst_128 = arith.constant dense<0.000000e+00> : vector<8xf32>
    %256 = vector.multi_reduction <add>, %255, %cst_128 [1] : vector<8x32xf32> to vector<8xf32>
    %257 = vector.shape_cast %256 : vector<8xf32> to vector<8x1xf32>
    %cst_129 = arith.constant 3.200000e+01 : f32
    %258 = vector.broadcast %cst_129 : f32 to vector<8x1xf32>
    %259 = arith.divf %257, %258 : vector<8x1xf32>
    %cst_130 = arith.constant 9.99999974E-6 : f32
    %260 = vector.broadcast %cst_130 : f32 to vector<8x1xf32>
    %261 = arith.addf %259, %260 : vector<8x1xf32>
    %262 = math.rsqrt %261 : vector<8x1xf32>
    %263 = vector.broadcast %262 : vector<8x1xf32> to vector<8x32xf32>
    %264 = arith.mulf %254, %263 : vector<8x32xf32>
    %265 = vector.broadcast %246 : vector<1x32xf32> to vector<8x32xf32>
    %266 = arith.mulf %264, %265 : vector<8x32xf32>
    %267 = vector.broadcast %248 : vector<1x32xf32> to vector<8x32xf32>
    %268 = arith.addf %266, %267 : vector<8x32xf32>
    %c1_131 = arith.constant 1 : index
    %c0_132 = arith.constant 0 : index
    %c0_133 = arith.constant 0 : index
    %269 = vector.load %arg10[%c1_131, %c0_132, %c0_133] : memref<2x32x64xf32, #tpu.memory_space<vmem>>, vector<1x32x64xf32>
    %270 = vector.shape_cast %269 : vector<1x32x64xf32> to vector<32x64xf32>
    %cst_134 = arith.constant dense<0.000000e+00> : vector<8x64xf32>
    %271 = tpu.matmul %268, %270, %cst_134 {dimension_numbers = #tpu.dot_dimension_numbers<[1], [0], [0], [1], [0, 0, 1, 1], [], []>} : vector<8x32xf32>, vector<32x64xf32>, vector<8x64xf32> -> vector<8x64xf32>
    %c1_135 = arith.constant 1 : index
    %c0_136 = arith.constant 0 : index
    %c0_137 = arith.constant 0 : index
    %272 = vector.load %arg11[%c1_135, %c0_136, %c0_137] : memref<2x1x64xf32, #tpu.memory_space<vmem>>, vector<1x1x64xf32>
    %273 = vector.shape_cast %272 : vector<1x1x64xf32> to vector<1x64xf32>
    %274 = vector.broadcast %273 : vector<1x64xf32> to vector<8x64xf32>
    %275 = arith.addf %271, %274 : vector<8x64xf32>
    %cst_138 = arith.constant 0.000000e+00 : f32
    %276 = vector.broadcast %cst_138 : f32 to vector<8x64xf32>
    %277 = arith.maximumf %275, %276 : vector<8x64xf32>
    %c1_139 = arith.constant 1 : index
    %c0_140 = arith.constant 0 : index
    %c0_141 = arith.constant 0 : index
    %278 = vector.load %arg12[%c1_139, %c0_140, %c0_141] : memref<2x64x32xf32, #tpu.memory_space<vmem>>, vector<1x64x32xf32>
    %279 = vector.shape_cast %278 : vector<1x64x32xf32> to vector<64x32xf32>
    %cst_142 = arith.constant dense<0.000000e+00> : vector<8x32xf32>
    %280 = tpu.matmul %277, %279, %cst_142 {dimension_numbers = #tpu.dot_dimension_numbers<[1], [0], [0], [1], [0, 0, 1, 1], [], []>} : vector<8x64xf32>, vector<64x32xf32>, vector<8x32xf32> -> vector<8x32xf32>
    %c1_143 = arith.constant 1 : index
    %c0_144 = arith.constant 0 : index
    %c0_145 = arith.constant 0 : index
    %281 = vector.load %arg13[%c1_143, %c0_144, %c0_145] : memref<2x1x32xf32, #tpu.memory_space<vmem>>, vector<1x1x32xf32>
    %282 = vector.shape_cast %281 : vector<1x1x32xf32> to vector<1x32xf32>
    %283 = vector.broadcast %282 : vector<1x32xf32> to vector<8x32xf32>
    %284 = arith.addf %280, %283 : vector<8x32xf32>
    %285 = arith.addf %268, %284 : vector<8x32xf32>
    %c1_146 = arith.constant 1 : index
    %c0_147 = arith.constant 0 : index
    %c0_148 = arith.constant 0 : index
    %286 = vector.load %arg14[%c1_146, %c0_147, %c0_148] : memref<2x1x32xf32, #tpu.memory_space<vmem>>, vector<1x1x32xf32>
    %287 = vector.shape_cast %286 : vector<1x1x32xf32> to vector<1x32xf32>
    %c1_149 = arith.constant 1 : index
    %c0_150 = arith.constant 0 : index
    %c0_151 = arith.constant 0 : index
    %288 = vector.load %arg15[%c1_149, %c0_150, %c0_151] : memref<2x1x32xf32, #tpu.memory_space<vmem>>, vector<1x1x32xf32>
    %289 = vector.shape_cast %288 : vector<1x1x32xf32> to vector<1x32xf32>
    %cst_152 = arith.constant dense<0.000000e+00> : vector<8xf32>
    %290 = vector.multi_reduction <add>, %285, %cst_152 [1] : vector<8x32xf32> to vector<8xf32>
    %291 = vector.shape_cast %290 : vector<8xf32> to vector<8x1xf32>
    %cst_153 = arith.constant 3.200000e+01 : f32
    %292 = vector.broadcast %cst_153 : f32 to vector<8x1xf32>
    %293 = arith.divf %291, %292 : vector<8x1xf32>
    %294 = vector.broadcast %293 : vector<8x1xf32> to vector<8x32xf32>
    %295 = arith.subf %285, %294 : vector<8x32xf32>
    %296 = arith.mulf %295, %295 : vector<8x32xf32>
    %cst_154 = arith.constant dense<0.000000e+00> : vector<8xf32>
    %297 = vector.multi_reduction <add>, %296, %cst_154 [1] : vector<8x32xf32> to vector<8xf32>
    %298 = vector.shape_cast %297 : vector<8xf32> to vector<8x1xf32>
    %cst_155 = arith.constant 3.200000e+01 : f32
    %299 = vector.broadcast %cst_155 : f32 to vector<8x1xf32>
    %300 = arith.divf %298, %299 : vector<8x1xf32>
    %cst_156 = arith.constant 9.99999974E-6 : f32
    %301 = vector.broadcast %cst_156 : f32 to vector<8x1xf32>
    %302 = arith.addf %300, %301 : vector<8x1xf32>
    %303 = math.rsqrt %302 : vector<8x1xf32>
    %304 = vector.broadcast %303 : vector<8x1xf32> to vector<8x32xf32>
    %305 = arith.mulf %295, %304 : vector<8x32xf32>
    %306 = vector.broadcast %287 : vector<1x32xf32> to vector<8x32xf32>
    %307 = arith.mulf %305, %306 : vector<8x32xf32>
    %308 = vector.broadcast %289 : vector<1x32xf32> to vector<8x32xf32>
    %309 = arith.addf %307, %308 : vector<8x32xf32>
    %c0_157 = arith.constant 0 : index
    %c0_158 = arith.constant 0 : index
    %310 = vector.load %arg16[%c0_157, %c0_158] : memref<32x64xf32, #tpu.memory_space<vmem>>, vector<32x64xf32>
    %cst_159 = arith.constant dense<0.000000e+00> : vector<8x64xf32>
    %311 = tpu.matmul %309, %310, %cst_159 {dimension_numbers = #tpu.dot_dimension_numbers<[1], [0], [0], [1], [0, 0, 1, 1], [], []>} : vector<8x32xf32>, vector<32x64xf32>, vector<8x64xf32> -> vector<8x64xf32>
    %c0_160 = arith.constant 0 : index
    %c0_161 = arith.constant 0 : index
    %312 = vector.load %arg17[%c0_160, %c0_161] : memref<1x64xf32, #tpu.memory_space<vmem>>, vector<1x64xf32>
    %313 = vector.broadcast %312 : vector<1x64xf32> to vector<8x64xf32>
    %314 = arith.addf %311, %313 : vector<8x64xf32>
    %c0_162 = arith.constant 0 : index
    %c0_163 = arith.constant 0 : index
    %c0_164 = arith.constant 0 : index
    %315 = vector.load %arg18[%c0_162, %c0_163, %c0_164] : memref<1x8x64xf32, #tpu.memory_space<vmem>>, vector<1x8x64xf32>
    %316 = vector.shape_cast %315 : vector<1x8x64xf32> to vector<8x64xf32>
    %317 = vector.shape_cast %314 : vector<8x64xf32> to vector<1x8x64xf32>
    tpu.vector_store %arg18[%c0_162, %c0_163, %c0_164], %317 {strides = array<i32>} : memref<1x8x64xf32, #tpu.memory_space<vmem>>, vector<1x8x64xf32>,
    return
  }
  func.func @transform_0(%arg0: i32) -> (i32, i32, i32) {
    %c0_i32 = arith.constant 0 : i32
    %c0_i32_0 = arith.constant 0 : i32
    %c0_i32_1 = arith.constant 0 : i32
    return %arg0, %c0_i32, %c0_i32_0 : i32, i32, i32
  }
  func.func @transform_1(%arg0: i32) -> (i32, i32) {
    %c0_i32 = arith.constant 0 : i32
    %c0_i32_0 = arith.constant 0 : i32
    %c0_i32_1 = arith.constant 0 : i32
    return %c0_i32, %c0_i32_0 : i32, i32
  }
  func.func @transform_2(%arg0: i32) -> (i32, i32) {
    %c0_i32 = arith.constant 0 : i32
    %c0_i32_0 = arith.constant 0 : i32
    %c0_i32_1 = arith.constant 0 : i32
    return %c0_i32, %c0_i32_0 : i32, i32
  }
  func.func @transform_3(%arg0: i32) -> (i32, i32, i32) {
    %c0_i32 = arith.constant 0 : i32
    %c0_i32_0 = arith.constant 0 : i32
    %c0_i32_1 = arith.constant 0 : i32
    %c0_i32_2 = arith.constant 0 : i32
    return %c0_i32, %c0_i32_0, %c0_i32_1 : i32, i32, i32
  }
  func.func @transform_4(%arg0: i32) -> (i32, i32, i32) {
    %c0_i32 = arith.constant 0 : i32
    %c0_i32_0 = arith.constant 0 : i32
    %c0_i32_1 = arith.constant 0 : i32
    %c0_i32_2 = arith.constant 0 : i32
    return %c0_i32, %c0_i32_0, %c0_i32_1 : i32, i32, i32
  }
  func.func @transform_5(%arg0: i32) -> (i32, i32, i32) {
    %c0_i32 = arith.constant 0 : i32
    %c0_i32_0 = arith.constant 0 : i32
    %c0_i32_1 = arith.constant 0 : i32
    %c0_i32_2 = arith.constant 0 : i32
    return %c0_i32, %c0_i32_0, %c0_i32_1 : i32, i32, i32
  }
  func.func @transform_6(%arg0: i32) -> (i32, i32, i32) {
    %c0_i32 = arith.constant 0 : i32
    %c0_i32_0 = arith.constant 0 : i32
    %c0_i32_1 = arith.constant 0 : i32
    %c0_i32_2 = arith.constant 0 : i32
    return %c0_i32, %c0_i32_0, %c0_i32_1 : i32, i32, i32
  }
  func.func @transform_7(%arg0: i32) -> (i32, i32, i32) {
    %c0_i32 = arith.constant 0 : i32
    %c0_i32_0 = arith.constant 0 : i32
    %c0_i32_1 = arith.constant 0 : i32
    %c0_i32_2 = arith.constant 0 : i32
    return %c0_i32, %c0_i32_0, %c0_i32_1 : i32, i32, i32
  }
  func.func @transform_8(%arg0: i32) -> (i32, i32, i32) {
    %c0_i32 = arith.constant 0 : i32
    %c0_i32_0 = arith.constant 0 : i32
    %c0_i32_1 = arith.constant 0 : i32
    %c0_i32_2 = arith.constant 0 : i32
    return %c0_i32, %c0_i32_0, %c0_i32_1 : i32, i32, i32
  }
  func.func @transform_9(%arg0: i32) -> (i32, i32, i32) {
    %c0_i32 = arith.constant 0 : i32
    %c0_i32_0 = arith.constant 0 : i32
    %c0_i32_1 = arith.constant 0 : i32
    %c0_i32_2 = arith.constant 0 : i32
    return %c0_i32, %c0_i32_0, %c0_i32_1 : i32, i32, i32
  }
  func.func @transform_10(%arg0: i32) -> (i32, i32, i32) {
    %c0_i32 = arith.constant 0 : i32
    %c0_i32_0 = arith.constant 0 : i32
    %c0_i32_1 = arith.constant 0 : i32
    %c0_i32_2 = arith.constant 0 : i32
    return %c0_i32, %c0_i32_0, %c0_i32_1 : i32, i32, i32
  }
  func.func @transform_11(%arg0: i32) -> (i32, i32, i32) {
    %c0_i32 = arith.constant 0 : i32
    %c0_i32_0 = arith.constant 0 : i32
    %c0_i32_1 = arith.constant 0 : i32
    %c0_i32_2 = arith.constant 0 : i32
    return %c0_i32, %c0_i32_0, %c0_i32_1 : i32, i32, i32
  }
  func.func @transform_12(%arg0: i32) -> (i32, i32, i32) {
    %c0_i32 = arith.constant 0 : i32
    %c0_i32_0 = arith.constant 0 : i32
    %c0_i32_1 = arith.constant 0 : i32
    %c0_i32_2 = arith.constant 0 : i32
    return %c0_i32, %c0_i32_0, %c0_i32_1 : i32, i32, i32
  }
  func.func @transform_13(%arg0: i32) -> (i32, i32, i32) {
    %c0_i32 = arith.constant 0 : i32
    %c0_i32_0 = arith.constant 0 : i32
    %c0_i32_1 = arith.constant 0 : i32
    %c0_i32_2 = arith.constant 0 : i32
    return %c0_i32, %c0_i32_0, %c0_i32_1 : i32, i32, i32
  }
  func.func @transform_14(%arg0: i32) -> (i32, i32, i32) {
    %c0_i32 = arith.constant 0 : i32
    %c0_i32_0 = arith.constant 0 : i32
    %c0_i32_1 = arith.constant 0 : i32
    %c0_i32_2 = arith.constant 0 : i32
    return %c0_i32, %c0_i32_0, %c0_i32_1 : i32, i32, i32
  }
  func.func @transform_15(%arg0: i32) -> (i32, i32) {
    %c0_i32 = arith.constant 0 : i32
    %c0_i32_0 = arith.constant 0 : i32
    %c0_i32_1 = arith.constant 0 : i32
    return %c0_i32, %c0_i32_0 : i32, i32
  }
  func.func @transform_16(%arg0: i32) -> (i32, i32) {
    %c0_i32 = arith.constant 0 : i32
    %c0_i32_0 = arith.constant 0 : i32
    %c0_i32_1 = arith.constant 0 : i32
    return %c0_i32, %c0_i32_0 : i32, i32
  }
  func.func @transform_17(%arg0: i32) -> (i32, i32, i32) {
    %c0_i32 = arith.constant 0 : i32
    %c0_i32_0 = arith.constant 0 : i32
    %c0_i32_1 = arith.constant 0 : i32
    return %arg0, %c0_i32, %c0_i32_0 : i32, i32, i32
  }
}

</mosaic_0001>

<bundles_post_ra>
// kernel: wind_enc_forward.1
= control target key start
LH: loop header
LB: loop body
LE: loop exit
PB: predicated region body
PF: predicated region fallthrough
CT: control target
= control target key end

     0   :  { %s5722_s0 = inlined_call_operand.hbm [shape: f32[2,8,64], index: 0, kind: input, shape index: {}]   ;;  %s5723_s1 = inlined_call_operand.vmem [shape: f32[8,32], index: 1, kind: input, shape index: {}]   ;;  %s5724_s2 = inlined_call_operand.vmem [shape: f32[64,32], index: 2, kind: input, shape index: {}]   ;;  %s5725_s3 = inlined_call_operand.vmem [shape: f32[2,32,96], index: 3, kind: input, shape index: {}]   ;;  %s5726_s4 = inlined_call_operand.vmem [shape: f32[2,1,96], index: 4, kind: input, shape index: {}]   ;;  %s5727_s5 = inlined_call_operand.hbm [shape: f32[8,8,32], index: 5, kind: input, shape index: {}]   ;;  %s5728_s6 = inlined_call_operand.hbm [shape: f32[2,1,32], index: 6, kind: input, shape index: {}]   ;;  %s5729_s7 = inlined_call_operand.hbm [shape: f32[2,1,32], index: 7, kind: input, shape index: {}]   ;;  %s5730_s8 = inlined_call_operand.hbm [shape: f32[2,1,32], index: 8, kind: input, shape index: {}]   ;;  %s5731_s9 = inlined_call_operand.hbm [shape: f32[2,32,64], index: 9, kind: input, shape index: {}]   ;;  %s5732_s10 = inlined_call_operand.hbm [shape: f32[2,1,64], index: 10, kind: input, shape index: {}]   ;;  %s5733_s11 = inlined_call_operand.vmem [shape: f32[2,64,32], index: 11, kind: input, shape index: {}]   ;;  %s5734_s12 = inlined_call_operand.hbm [shape: f32[2,1,32], index: 12, kind: input, shape index: {}]   ;;  %s5735_s13 = inlined_call_operand.hbm [shape: f32[2,1,32], index: 13, kind: input, shape index: {}]   ;;  %s5736_s14 = inlined_call_operand.hbm [shape: f32[2,1,32], index: 14, kind: input, shape index: {}]   ;;  %s5737_s15 = inlined_call_operand.hbm [shape: f32[32,64], index: 15, kind: input, shape index: {}]   ;;  %s5738_s16 = inlined_call_operand.hbm [shape: f32[1,64], index: 16, kind: input, shape index: {}]   ;;  %s5739_s17 = inlined_call_operand.hbm [shape: f32[2,8,64], index: 17, kind: output, shape index: {}]  }
   0x1   :  { %5774 = sst [smem:[#allocation33_spill]] %s5722_s0 }
   0x2   :  { %5775 = sst [smem:[#allocation34_spill]] %s5723_s1 }
   0x3   :  { %5776 = sst [smem:[#allocation35_spill]] %s5724_s2 }
   0x4   :  { %5777 = sst [smem:[#allocation36_spill]] %s5725_s3 }
   0x5   :  { %5778 = sst [smem:[#allocation37_spill]] %s5726_s4 }
   0x6   :  { %5779 = sst [smem:[#allocation38_spill]] %s5727_s5 }
   0x7   :  { %5780 = sst [smem:[#allocation39_spill]] %s5728_s6 }
   0x8   :  { %5781 = sst [smem:[#allocation40_spill]] %s5729_s7 }
   0x9   :  { %5782 = sst [smem:[#allocation41_spill]] %s5730_s8 }
   0xa   :  { %5783 = sst [smem:[#allocation42_spill]] %s5733_s11 }
   0xb   :  { %5784 = sst [smem:[#allocation43_spill]] %s5739_s17 }
   0xc   :  { %22 = vsyncpa [#allocation3], 0 }
   0xd   :  { %24 = vsyncpa [#allocation3 + $0x1], 0 }
   0xe   :  { %25 = vsyncpa [#allocation6], 0 }
   0xf   :  { %26 = vsyncpa [#allocation9], 0 }
  0x10   :  { %27 = vsyncpa [#allocation12], 0 }
  0x11   :  { %28 = vsyncpa [#allocation15], 0 }
  0x12   :  { %29 = vsyncpa [#allocation18], 0 }
  0x13   :  { %30 = vsyncpa [#allocation21], 0 }
  0x14   :  { %31 = vsyncpa [#allocation4], 0 }
  0x15   :  { %33 = vsyncpa [#allocation4 + $0x1], 0  ;;  %s4935_s24 = smov 0   ;;  %s4937_s25 = smov 0  }
  0x16   :  { %s4939_s26 = smov 0   ;;  %s4941_s27 = smov 0  }
  0x17 LB: > { %s4814_s28 = smov [#allocation5]   ;;  %s4956_s0 = sadd.s32 4294967295, %s4812_s27   ;;  %s4812_s27 = sphi %s4941_s27, %s5844_s27   ;;  %s4808_s26 = sphi %s4939_s26, %s5843_s26   ;;  %s4804_s25 = sphi %s4937_s25, %s5842_s25   ;;  %s4800_s24 = sphi %s4935_s24, %s5841_s24  }
  0x18   : > { %s456_s29 = sshll.u32 %s4814_s28, 4  ;;  %5785 = sst [smem:[#allocation31_spill]] %s4956_s0  ;;  %s4961_s29 = int_to_ptr.vmem [resolvable:$true] %s456_s29 }
  0x19   : > { %p3668_p0 = scmp.ge.s32.totalorder %s4812_s27, 1  ;;  %p5752_p1 = scmp.eq.s32.totalorder %s4956_s0, 0 }
  0x1a   : > { %p432_p2 = scmp.lt.s32.totalorder %s4812_s27, 3  ;;  %s4815_s19 = smov [#allocation8]  }
  0x1b   : > { %s482_s1 = sshll.u32 %s4815_s19, 4  ;;  %s4816_s20 = smov [#allocation11]   ;;  %s4976_s1 = int_to_ptr.vmem [resolvable:$true] %s482_s1 }
  0x1c   : > { %p4963_p3 = pnand %p3668_p0, %p432_p2  ;;  %s4978_s21 = sshll.u32 %s4816_s20, 4  ;;  %s509_s21 = int_to_ptr.vmem [resolvable:$true] %s4978_s21 }
  0x1d   : > { %s5789_s5 = sld [smem:[#allocation38_spill]] }
  0x1e   : > { %s5786_s30 = scalar_select %p4963_p3, 1, 0 }
  0x1f   : > { %p4217_p5 = pneg %p4963_p3 }
  0x20   : > { %5787 = sst [smem:[#allocation32_spill]] %s5786_s30 }
  0x21   : > { %p4972_p6 = pnand %p4217_p5, %p5752_p1 }
  0x23   : > { %s4384_s28 = scalar_lea.hbm %s5789_s5, 1024  ;;  %p4988_p8 = pneg %p4972_p6 }
  0x24   : > { %p4385_p7 = scmp.ne.s32.totalorder %s5789_s5, %s4384_s28  ;;  %p4391_p11 = scmp.lt.u32.totalorder %s4384_s28, %s5789_s5 }
  0x26   : > { %p4387_p9 = pnand %p4988_p8, %p4385_p7 }
  0x28   : > { %p4388_p10 = pneg %p4387_p9 }
  0x2a   : > { %p4393_p12 = pnand %p4391_p11, %p4388_p10 }
  0x2c   : > { %4396 = shalt.err (!%p4393_p12)
}
  0x2d   : > { %s4397_s11 = scalar_lea.vmem %s4961_s29, 1024  ;;  %p4405_p5 = scmp.lt.s32.totalorder %s4961_s29, %s4961_s29 }
  0x2e   : > { %p4398_p13 = scmp.ne.s32.totalorder %s4961_s29, %s4397_s11  ;;  %p4406_p4 = scmp.lt.s32.totalorder %s4397_s11, %s4397_s11 }
  0x30   : > { %p4400_p0 = pnand %p4398_p13, %p4988_p8  ;;  %p4407_p7 = por %p4406_p4, %p4405_p5 }
  0x32   : > { %p4401_p2 = pneg %p4400_p0 }
  0x34   : > { %p4408_p9 = pnand %p4407_p7, %p4401_p2 }
  0x36   : > { %4411 = shalt.err (!%p4408_p9)
}
  0x37   : > { %s5750_s17 = smov 128   ;;  %s5758_s22 = smov 8  }
  0x38   : > { %4220 = dma.hbm_to_vmem [thread:$0]  (!%p4972_p6), %s5789_s5, 1024, %s4961_s29, [#allocation6], %s5750_s17, %s5750_s17, %s5758_s22  }
  0x39   : > { %s5791_s7 = sld [smem:[#allocation40_spill]] }
  0x3f   : > { %s4412_s11 = scalar_lea.hbm %s5791_s7, 32 }
  0x40   : > { %p4413_p4 = scmp.ne.s32.totalorder %s5791_s7, %s4412_s11  ;;  %p4419_p12 = scmp.lt.u32.totalorder %s4412_s11, %s5791_s7 }
  0x42   : > { %p4415_p10 = pnand %p4413_p4, %p4988_p8 }
  0x44   : > { %p4416_p11 = pneg %p4415_p10 }
  0x46   : > { %p4421_p13 = pnand %p4419_p12, %p4416_p11 }
  0x48   : > { %4424 = shalt.err (!%p4421_p13)
}
  0x49   : > { %s4425_s29 = scalar_lea.vmem %s4976_s1, 32  ;;  %p4433_p7 = scmp.lt.s32.totalorder %s4976_s1, %s4976_s1 }
  0x4a   : > { %p4426_p0 = scmp.ne.s32.totalorder %s4976_s1, %s4425_s29  ;;  %p4434_p9 = scmp.lt.s32.totalorder %s4425_s29, %s4425_s29 }
  0x4c   : > { %p4428_p2 = pnand %p4426_p0, %p4988_p8  ;;  %p4435_p4 = por %p4434_p9, %p4433_p7 }
  0x4e   : > { %p4429_p5 = pneg %p4428_p2 }
  0x50   : > { %p4436_p10 = pnand %p4435_p4, %p4429_p5 }
  0x52   : > { %4439 = shalt.err (!%p4436_p10)
}
  0x53   : > { %s5754_s2 = smov 16   ;;  %s5756_s3 = smov 1  }
  0x54   : > { %4226 = dma.hbm_to_vmem [thread:$0]  (!%p4972_p6), %s5791_s7, 32, %s4976_s1, [#allocation9], %s5754_s2, %s5754_s2, %s5756_s3  }
  0x55   : > { %s4440_s19 = scalar_lea.hbm %s5731_s9, 1024 }
  0x56   : > { %p4441_p11 = scmp.ne.s32.totalorder %s5731_s9, %s4440_s19  ;;  %p4447_p0 = scmp.lt.u32.totalorder %s4440_s19, %s5731_s9 }
  0x58   : > { %p4443_p12 = pnand %p4441_p11, %p4988_p8 }
  0x5a   : > { %p4444_p13 = pneg %p4443_p12 }
  0x5c   : > { %p4449_p2 = pnand %p4447_p0, %p4444_p13 }
  0x5e   : > { %4452 = shalt.err (!%p4449_p2)
}
  0x5f   : > { %s4453_s0 = scalar_lea.vmem %s509_s21, 1024  ;;  %p4461_p4 = scmp.lt.s32.totalorder %s509_s21, %s509_s21 }
  0x60   : > { %p4454_p5 = scmp.ne.s32.totalorder %s509_s21, %s4453_s0  ;;  %p4462_p10 = scmp.lt.s32.totalorder %s4453_s0, %s4453_s0 }
  0x62   : > { %p4456_p7 = pnand %p4454_p5, %p4988_p8  ;;  %p4463_p1 = por %p4462_p10, %p4461_p4 }
  0x64   : > { %p4457_p9 = pneg %p4456_p7 }
  0x66   : > { %p4464_p3 = pnand %p4463_p1, %p4457_p9 }
  0x68   : > { %4467 = shalt.err (!%p4464_p3)
}
  0x69   : > { %s5792_s1 = smov 128   ;;  %s4821_s23 = smov [#allocation14]  }
  0x6a   : > { %4232 = dma.hbm_to_vmem [thread:$0]  (!%p4972_p6), %s5731_s9, 1024, %s509_s21, [#allocation12], %s5792_s1, %s5792_s1, %s5758_s22  }
  0x6b   : > { %s537_s28 = sshll.u32 %s4821_s23, 4  ;;  %s4822_s19 = smov [#allocation17]   ;;  %s538_s28 = int_to_ptr.vmem [resolvable:$true] %s537_s28 }
  0x6c   : > { %s563_s20 = sshll.u32 %s4822_s19, 4  ;;  %s4468_s0 = scalar_lea.hbm %s5734_s12, 32  ;;  %s564_s20 = int_to_ptr.vmem [resolvable:$true] %s563_s20 }
  0x6d   : > { %p4469_p1 = scmp.ne.s32.totalorder %s5734_s12, %s4468_s0  ;;  %p4475_p12 = scmp.lt.u32.totalorder %s4468_s0, %s5734_s12 }
  0x6f   : > { %p4471_p3 = pnand %p4469_p1, %p4988_p8 }
  0x71   : > { %p4472_p11 = pneg %p4471_p3 }
  0x73   : > { %p4477_p13 = pnand %p4475_p12, %p4472_p11 }
  0x75   : > { %4480 = shalt.err (!%p4477_p13)
}
  0x76   : > { %s4481_s21 = scalar_lea.vmem %s538_s28, 32  ;;  %p4489_p7 = scmp.lt.s32.totalorder %s538_s28, %s538_s28 }
  0x77   : > { %p4482_p0 = scmp.ne.s32.totalorder %s538_s28, %s4481_s21  ;;  %p4490_p9 = scmp.lt.s32.totalorder %s4481_s21, %s4481_s21 }
  0x79   : > { %p4484_p2 = pnand %p4482_p0, %p4988_p8  ;;  %p4491_p4 = por %p4490_p9, %p4489_p7 }
  0x7b   : > { %p4485_p5 = pneg %p4484_p2 }
  0x7d   : > { %p4492_p10 = pnand %p4491_p4, %p4485_p5 }
  0x7f   : > { %4495 = shalt.err (!%p4492_p10)
}
  0x80   : > { %s5793_s2 = smov 1   ;;  %s5794_s3 = smov 16  }
  0x81   : > { %4238 = dma.hbm_to_vmem [thread:$0]  (!%p4972_p6), %s5734_s12, 32, %s538_s28, [#allocation15], %s5794_s3, %s5794_s3, %s5793_s2  }
  0x82   : > { %s4496_s11 = scalar_lea.hbm %s5736_s14, 32 }
  0x83   : > { %p4497_p1 = scmp.ne.s32.totalorder %s5736_s14, %s4496_s11  ;;  %p4503_p12 = scmp.lt.u32.totalorder %s4496_s11, %s5736_s14 }
  0x85   : > { %p4499_p3 = pnand %p4497_p1, %p4988_p8 }
  0x87   : > { %p4500_p11 = pneg %p4499_p3 }
  0x89   : > { %p4505_p13 = pnand %p4503_p12, %p4500_p11 }
  0x8b   : > { %4508 = shalt.err (!%p4505_p13)
}
  0x8c   : > { %s4509_s5 = scalar_lea.vmem %s564_s20, 32  ;;  %p4517_p7 = scmp.lt.s32.totalorder %s564_s20, %s564_s20 }
  0x8d   : > { %p4510_p0 = scmp.ne.s32.totalorder %s564_s20, %s4509_s5  ;;  %p4518_p9 = scmp.lt.s32.totalorder %s4509_s5, %s4509_s5 }
  0x8f   : > { %p4512_p2 = pnand %p4510_p0, %p4988_p8  ;;  %p4519_p4 = por %p4518_p9, %p4517_p7 }
  0x91   : > { %p4513_p5 = pneg %p4512_p2 }
  0x93   : > { %p4520_p10 = pnand %p4519_p4, %p4513_p5 }
  0x95   : > { %4523 = shalt.err (!%p4520_p10)
}
  0x96   : > { %4244 = dma.hbm_to_vmem [thread:$0]  (!%p4972_p6), %s5736_s14, 32, %s564_s20, [#allocation18], %s5794_s3, %s5794_s3, %s5793_s2  }
  0x97   : > { %s4823_s23 = smov [#allocation7]   ;;  %s4824_s11 = smov [#allocation10]  }
  0x98   : > { %s469_s19 = sshll.u32 %s4823_s23, 4  ;;  %s495_s29 = sshll.u32 %s4824_s11, 4  ;;  %s470_s19 = int_to_ptr.vmem [resolvable:$true] %s469_s19  ;;  %s496_s29 = int_to_ptr.vmem [resolvable:$true] %s495_s29 }
  0x99   : > { %s5795_s6 = sld [smem:[#allocation39_spill]] }
  0x9f   : > { %s4524_s21 = scalar_lea.hbm %s5795_s6, 32 }
  0xa0   : > { %p4525_p1 = scmp.ne.s32.totalorder %s5795_s6, %s4524_s21  ;;  %p4531_p12 = scmp.lt.u32.totalorder %s4524_s21, %s5795_s6 }
  0xa2   : > { %p4527_p3 = pnand %p4525_p1, %p4988_p8 }
  0xa4   : > { %p4528_p11 = pneg %p4527_p3 }
  0xa6   : > { %p4533_p13 = pnand %p4531_p12, %p4528_p11 }
  0xa8   : > { %4536 = shalt.err (!%p4533_p13)
}
  0xa9   : > { %s4537_s20 = scalar_lea.vmem %s470_s19, 32  ;;  %p4545_p7 = scmp.lt.s32.totalorder %s470_s19, %s470_s19 }
  0xaa   : > { %p4538_p0 = scmp.ne.s32.totalorder %s470_s19, %s4537_s20  ;;  %p4546_p9 = scmp.lt.s32.totalorder %s4537_s20, %s4537_s20 }
  0xac   : > { %p4540_p2 = pnand %p4538_p0, %p4988_p8  ;;  %p4547_p4 = por %p4546_p9, %p4545_p7 }
  0xae   : > { %p4541_p5 = pneg %p4540_p2 }
  0xb0   : > { %p4548_p10 = pnand %p4547_p4, %p4541_p5 }
  0xb2   : > { %4551 = shalt.err (!%p4548_p10)
}
  0xb3   : > { %4223 = dma.hbm_to_vmem [thread:$0]  (!%p4972_p6), %s5795_s6, 32, %s470_s19, [#allocation6], %s5794_s3, %s5794_s3, %s5793_s2  }
  0xb4   : > { %s5796_s8 = sld [smem:[#allocation41_spill]] }
  0xba   : > { %s4552_s11 = scalar_lea.hbm %s5796_s8, 32 }
  0xbb   : > { %p4553_p1 = scmp.ne.s32.totalorder %s5796_s8, %s4552_s11  ;;  %p4559_p12 = scmp.lt.u32.totalorder %s4552_s11, %s5796_s8 }
  0xbd   : > { %p4555_p3 = pnand %p4553_p1, %p4988_p8 }
  0xbf   : > { %p4556_p11 = pneg %p4555_p3 }
  0xc1   : > { %p4561_p13 = pnand %p4559_p12, %p4556_p11 }
  0xc3   : > { %4564 = shalt.err (!%p4561_p13)
}
  0xc4   : > { %s4565_s28 = scalar_lea.vmem %s496_s29, 32  ;;  %p4573_p7 = scmp.lt.s32.totalorder %s496_s29, %s496_s29 }
  0xc5   : > { %p4566_p0 = scmp.ne.s32.totalorder %s496_s29, %s4565_s28  ;;  %p4574_p9 = scmp.lt.s32.totalorder %s4565_s28, %s4565_s28 }
  0xc7   : > { %p4568_p2 = pnand %p4566_p0, %p4988_p8  ;;  %p4575_p4 = por %p4574_p9, %p4573_p7 }
  0xc9   : > { %p4569_p5 = pneg %p4568_p2 }
  0xcb   : > { %p4576_p10 = pnand %p4575_p4, %p4569_p5 }
  0xcd   : > { %4579 = shalt.err (!%p4576_p10)
}
  0xce   : > { %4229 = dma.hbm_to_vmem [thread:$0]  (!%p4972_p6), %s5796_s8, 32, %s496_s29, [#allocation9], %s5794_s3, %s5794_s3, %s5793_s2  }
  0xcf   : > { %s4825_s7 = smov [#allocation13]   ;;  %s4826_s30 = smov [#allocation16]  }
  0xd0   : > { %s521_s22 = sshll.u32 %s4825_s7, 4  ;;  %s550_s23 = sshll.u32 %s4826_s30, 4  ;;  %s522_s22 = int_to_ptr.vmem [resolvable:$true] %s521_s22  ;;  %s551_s23 = int_to_ptr.vmem [resolvable:$true] %s550_s23 }
  0xd1   : > { %s4580_s17 = scalar_lea.hbm %s5732_s10, 32 }
  0xd2   : > { %p4581_p1 = scmp.ne.s32.totalorder %s5732_s10, %s4580_s17  ;;  %p4587_p12 = scmp.lt.u32.totalorder %s4580_s17, %s5732_s10 }
  0xd4   : > { %p4583_p3 = pnand %p4581_p1, %p4988_p8 }
  0xd6   : > { %p4584_p11 = pneg %p4583_p3 }
  0xd8   : > { %p4589_p13 = pnand %p4587_p12, %p4584_p11 }
  0xda   : > { %4592 = shalt.err (!%p4589_p13)
}
  0xdb   : > { %s4593_s29 = scalar_lea.vmem %s522_s22, 32  ;;  %p4601_p7 = scmp.lt.s32.totalorder %s522_s22, %s522_s22 }
  0xdc   : > { %p4594_p0 = scmp.ne.s32.totalorder %s522_s22, %s4593_s29  ;;  %p4602_p9 = scmp.lt.s32.totalorder %s4593_s29, %s4593_s29 }
  0xde   : > { %p4596_p2 = pnand %p4594_p0, %p4988_p8  ;;  %p4603_p4 = por %p4602_p9, %p4601_p7 }
  0xe0   : > { %p4597_p5 = pneg %p4596_p2 }
  0xe2   : > { %p4604_p10 = pnand %p4603_p4, %p4597_p5 }
  0xe4   : > { %4607 = shalt.err (!%p4604_p10)
}
  0xe5   : > { %4235 = dma.hbm_to_vmem [thread:$0]  (!%p4972_p6), %s5732_s10, 32, %s522_s22, [#allocation12], %s5794_s3, %s5794_s3, %s5793_s2  }
  0xe6   : > { %s4608_s0 = scalar_lea.hbm %s5735_s13, 32 }
  0xe7   : > { %p4609_p1 = scmp.ne.s32.totalorder %s5735_s13, %s4608_s0  ;;  %p4615_p12 = scmp.lt.u32.totalorder %s4608_s0, %s5735_s13 }
  0xe9   : > { %p4611_p3 = pnand %p4609_p1, %p4988_p8 }
  0xeb   : > { %p4612_p11 = pneg %p4611_p3 }
  0xed   : > { %p4617_p13 = pnand %p4615_p12, %p4612_p11 }
  0xef   : > { %4620 = shalt.err (!%p4617_p13)
}
  0xf0   : > { %s4621_s19 = scalar_lea.vmem %s551_s23, 32  ;;  %p4629_p7 = scmp.lt.s32.totalorder %s551_s23, %s551_s23 }
  0xf1   : > { %p4622_p0 = scmp.ne.s32.totalorder %s551_s23, %s4621_s19  ;;  %p4630_p9 = scmp.lt.s32.totalorder %s4621_s19, %s4621_s19 }
  0xf3   : > { %p4624_p2 = pnand %p4622_p0, %p4988_p8  ;;  %p4631_p4 = por %p4630_p9, %p4629_p7 }
  0xf5   : > { %p4625_p5 = pneg %p4624_p2 }
  0xf7   : > { %p4632_p10 = pnand %p4631_p4, %p4625_p5 }
  0xf9   : > { %4635 = shalt.err (!%p4632_p10)
}
  0xfa   : > { %4241 = dma.hbm_to_vmem [thread:$0]  (!%p4972_p6), %s5735_s13, 32, %s551_s23, [#allocation15], %s5794_s3, %s5794_s3, %s5793_s2  }
  0xfb   : > { %s4827_s20 = smov [#allocation19]   ;;  %s4828_s30 = smov [#allocation20]  }
  0xfc   : > { %s576_s7 = sshll.u32 %s4827_s20, 4  ;;  %s590_s11 = sshll.u32 %s4828_s30, 4  ;;  %s577_s7 = int_to_ptr.vmem [resolvable:$true] %s576_s7  ;;  %s591_s11 = int_to_ptr.vmem [resolvable:$true] %s590_s11 }
  0xfd   : > { %s4636_s21 = scalar_lea.hbm %s5737_s15, 512 }
  0xfe   : > { %p4637_p1 = scmp.ne.s32.totalorder %s5737_s15, %s4636_s21  ;;  %p4643_p12 = scmp.lt.u32.totalorder %s4636_s21, %s5737_s15 }
 0x100   : > { %p4639_p3 = pnand %p4637_p1, %p4988_p8 }
 0x102   : > { %p4640_p11 = pneg %p4639_p3 }
 0x104   : > { %p4645_p13 = pnand %p4643_p12, %p4640_p11 }
 0x106   : > { %4648 = shalt.err (!%p4645_p13)
}
 0x107   : > { %s4649_s2 = scalar_lea.vmem %s577_s7, 512  ;;  %p4657_p7 = scmp.lt.s32.totalorder %s577_s7, %s577_s7 }
 0x108   : > { %p4650_p0 = scmp.ne.s32.totalorder %s577_s7, %s4649_s2  ;;  %p4658_p9 = scmp.lt.s32.totalorder %s4649_s2, %s4649_s2 }
 0x10a   : > { %p4652_p2 = pnand %p4650_p0, %p4988_p8  ;;  %p4659_p4 = por %p4658_p9, %p4657_p7 }
 0x10c   : > { %p4653_p5 = pneg %p4652_p2 }
 0x10e   : > { %p4660_p10 = pnand %p4659_p4, %p4653_p5 }
 0x110   : > { %4663 = shalt.err (!%p4660_p10)
}
 0x111   : > { %s5797_s3 = smov 8   ;;  %s4664_s0 = scalar_lea.hbm %s5738_s16, 16 }
 0x112   : > { %4247 = dma.hbm_to_vmem [thread:$0]  (!%p4972_p6), %s5737_s15, 512, %s577_s7, [#allocation18], %s5792_s1, %s5792_s1, %s5797_s3  }
 0x113   : > { %p4665_p1 = scmp.ne.s32.totalorder %s5738_s16, %s4664_s0  ;;  %p4671_p12 = scmp.lt.u32.totalorder %s4664_s0, %s5738_s16 }
 0x115   : > { %p4667_p3 = pnand %p4665_p1, %p4988_p8 }
 0x117   : > { %p4668_p11 = pneg %p4667_p3 }
 0x119   : > { %p4673_p13 = pnand %p4671_p12, %p4668_p11 }
 0x11b   : > { %4676 = shalt.err (!%p4673_p13)
}
 0x11c   : > { %s4677_s19 = scalar_lea.vmem %s591_s11, 16  ;;  %s4684_s1 = scalar_lea.vmem %s591_s11, 32 }
 0x11d   : > { %p4678_p0 = scmp.ne.s32.totalorder %s591_s11, %s4677_s19  ;;  %p4685_p7 = scmp.lt.s32.totalorder %s591_s11, %s591_s11 }
 0x11e   : > { %p4686_p9 = scmp.lt.s32.totalorder %s4684_s1, %s4677_s19 }
 0x11f   : > { %p4680_p2 = pnand %p4678_p0, %p4988_p8 }
 0x120   : > { %p4687_p4 = por %p4686_p9, %p4685_p7 }
 0x121   : > { %p4681_p5 = pneg %p4680_p2 }
 0x123   : > { %p4688_p10 = pnand %p4687_p4, %p4681_p5 }
 0x125   : > { %4691 = shalt.err (!%p4688_p10)
}
 0x126   : > { %s5798_s4 = sld [smem:[#allocation31_spill]]  ;;  %s3667_s2 = sadd.s32 4294967294, %s4812_s27  }
 0x127   : > { %4250 = dma.hbm_to_vmem [thread:$0]  (!%p4972_p6), %s5738_s16, 16, %s591_s11, [#allocation21]  }
 0x128   : > { %s5227_s18 = sadd.s32 1, %s4812_s27   ;;  %s46_s3 = sadd.s32 1, %s4808_s26 }
 0x129   : > { %s43_s23 = ssub.s32 %s4812_s27, %s5227_s18  ;;  %p53_p8 = scmp.ne.s32.totalorder %s4808_s26, %s4804_s25 }
 0x12a   : > { %p44_p1 = scmp.eq.s32.totalorder %s43_s23, 0  ;;  %p54_p3 = scmp.eq.s32.totalorder %s4812_s27, 0 }
 0x12b   : > { %p59_p11 = scmp.ne.s32.totalorder %s4804_s25, %s4800_s24  ;;  %p425_p5 = scmp.eq.s32.totalorder %s3667_s2, 1 }
 0x12c   : > { %p419_p12 = scmp.eq.s32.totalorder %s5798_s4, 1  ;;  %p55_p13 = por %p54_p3, %p53_p8 }
 0x12d   : > { %s5239_s29 = scalar_select %p44_p1, %s4808_s26, %s46_s3  }
 0x12e   : > { %p5799_p0 = scmp.eq.s32.totalorder %s5798_s4, 0  ;;  %p5247_p6 = por %p419_p12, %p53_p8 }
 0x12f   : > { %p4270_p7 = scmp.lt.s32.totalorder %s4812_s27, 2  ;;  %s601_s30 = sand.u32 1, %s4808_s26  }
 0x130   : > { %p5243_p2 = por %p5799_p0, %p59_p11  ;;  %p5253_p9 = por %p425_p5, %p59_p11 }
 0x131   : > { %s5801_s11 = scalar_select %p5247_p6, 1, 0 }
 0x132   : > { %s5802_s0 = scalar_select %p5253_p9, 1, 0 }
 0x133   : > { %s3681_s17 = sshll.u32 %s601_s30, 3  ;;  %s3682_s21 = sshll.u32 %s4812_s27, 7 }
 0x134   : > { %s5803_s19 = sld [smem:[#allocation33_spill]]  ;;  %s605_s7 = scalar_lea.vmem [#allocation2], %s3681_s17 }
 0x135   : > { %s612_s22 = sshll.u32 %s605_s7, 4  ;;  %p5263_p4 = pnand %p4270_p7, %p55_p13  ;;  %s5267_s22 = int_to_ptr.vmem [resolvable:$true] %s612_s22 }
 0x136   : > { %s602_s2 = scalar_lea.sflag [#allocation3], %s601_s30 }
 0x137   : > { %p4694_p8 = pneg %p5263_p4 }
 0x13a   : > { %s5261_s1 = scalar_lea.hbm %s5803_s19, %s3682_s21  ;;  %s4697_s21 = scalar_lea.hbm %s5803_s19, 256 }
 0x13b   : > { %s4692_s3 = scalar_lea.hbm %s5261_s1, 128  ;;  %p4698_p11 = scmp.lt.u32.totalorder %s5261_s1, %s5803_s19 }
 0x13c   : > { %p4693_p10 = scmp.ne.s32.totalorder %s5261_s1, %s4692_s3  ;;  %p4699_p12 = scmp.lt.u32.totalorder %s4697_s21, %s4692_s3 }
 0x13d   : > { %p4701_p0 = scmp.lt.u32.totalorder %s4692_s3, %s5261_s1 }
 0x13e   : > { %p4695_p1 = pnand %p4694_p8, %p4693_p10  ;;  %p4700_p13 = por %p4699_p12, %p4698_p11 }
 0x140   : > { %p4696_p3 = pneg %p4695_p1  ;;  %p4702_p5 = por %p4701_p0, %p4700_p13 }
 0x142   : > { %p4703_p7 = pnand %p4702_p5, %p4696_p3 }
 0x144   : > { %4706 = shalt.err (!%p4703_p7)
}
 0x145   : > { %s4707_s30 = scalar_lea.vmem %s5267_s22, 128  ;;  %s4829_s7 = smov [#allocation2]  }
 0x146   : > { %p4708_p10 = scmp.ne.s32.totalorder %s5267_s22, %s4707_s30  ;;  %s4712_s23 = sshll.u32 %s4829_s7, 4  ;;  %s4713_s23 = int_to_ptr.vmem [resolvable:$false] %s4712_s23 }
 0x147   : > { %s4714_s17 = scalar_lea.vmem %s4713_s23, 256  ;;  %p4715_p6 = scmp.lt.s32.totalorder %s5267_s22, %s4713_s23 }
 0x148   : > { %p4710_p1 = pnand %p4708_p10, %p4694_p8  ;;  %p4716_p11 = scmp.lt.s32.totalorder %s4714_s17, %s4707_s30 }
 0x14a   : > { %p4711_p9 = pneg %p4710_p1  ;;  %p4717_p12 = por %p4716_p11, %p4715_p6 }
 0x14c   : > { %p4718_p13 = pnand %p4717_p12, %p4711_p9 }
 0x14e   : > { %4721 = shalt.err (!%p4718_p13)
}
 0x14f   : > { %4254 = dma.hbm_to_vmem [thread:$0]  (!%p5263_p4), %s5261_s1, 128, %s5267_s22, %s602_s2  }
 0x150   : > { %s5805_s3 = sld [smem:[#allocation32_spill]] }
 0x156   : > { %p5806_p3 = scmp.ne.s32.totalorder %s5805_s3, 0 }
 0x157   : > { %s5297_s21 = sand.u32 (!%p5806_p3), 1, %s4804_s25  }
 0x158   : > { %621 = sbr.rel (%p5806_p3) target bundleno = 8710 (0x2206), region = 88  ;;  %s5760_s5 = sshll.u32 (!%p5806_p3), %s5297_s21, 3 }
 0x159   : > { %s624_s28 = scalar_lea.sflag (!%p5806_p3), [#allocation3], %s5297_s21  ;;  %s5303_s30 = scalar_lea.vmem (!%p5806_p3), [#allocation2], %s5760_s5 }
 0x15f   : > { %4767 = dma.done.wait (%p5243_p2), %s624_s28, 128  }
 0x160   : > { %4769 = vsyncadd (%p5243_p2), %s624_s28, 4294967168  ;;  %s5807_s1 = sld [smem:[#allocation31_spill]] }
 0x166   : > { %p5808_p6 = scmp.eq.s32.totalorder %s5807_s1, 0 }
 0x168   : > { %4771 = dma.done.wait (%p5808_p6), [#allocation6], 1056   ;;  %p5809_p9 = pmov %p5808_p6 }
 0x169   : > { %p5810_p4 = pmov %p5808_p6 }
 0x16a   : > { %4773 = vsyncadd (%p5809_p9), [#allocation6], 4294966240 }
 0x16b   : > { %4775 = dma.done.wait (%p5810_p4), [#allocation9], 64   ;;  %p5811_p8 = pmov %p5810_p4 }
 0x16c   : > { %p5812_p0 = pmov %p5810_p4 }
 0x16d   : > { %4777 = vsyncadd (%p5811_p8), [#allocation9], 4294967232 }
 0x16e   : > { %4779 = dma.done.wait (%p5812_p0), [#allocation12], 1056   ;;  %p5813_p5 = pmov %p5812_p0 }
 0x16f   : > { %p5814_p2 = pmov %p5812_p0 }
 0x170   : > { %4781 = vsyncadd (%p5813_p5), [#allocation12], 4294966240 }
 0x171   : > { %4783 = dma.done.wait (%p5814_p2), [#allocation15], 64   ;;  %p5815_p7 = pmov %p5812_p0 }
 0x172   : > { %p5816_p10 = pmov %p5812_p0 }
 0x173   : > { %4785 = vsyncadd (%p5815_p7), [#allocation15], 4294967232 }
 0x174   : > { %4787 = dma.done.wait (%p5816_p10), [#allocation18], 544   ;;  %p5817_p1 = pmov %p5812_p0 }
 0x175   : > { %p5818_p11 = pmov %p5812_p0 }
 0x176   : > { %4789 = vsyncadd (%p5817_p1), [#allocation18], 4294966752 }
 0x177   : > { %4791 = dma.done.wait (%p5818_p11), [#allocation21], 16   ;;  %p5819_p12 = pmov %p5812_p0 }
 0x178   : > { %v4830_v0 = vmov 0.0|0.0   ;;  %vm4831_vm0 = vmmov 0   ;;  %v4832_v1 = vmov 0.0   ;;  %s5820_s4 = sld [smem:[#allocation35_spill]]  ;;  %s5821_s8 = sld [smem:[#allocation36_spill]]  ;;  %v722_v17 = vld [vmem:[%s5303_s30] sm:$0xff] }
 0x179   : > { %4793 = vsyncadd (%p5819_p12), [#allocation21], 4294967280  ;;  %4103 = vmatprep.subr.bf16.mxu0 %v4830_v0  ;;  %3887 = vmatprep.mubr.msk.f32.mxu0 %vm4831_vm0, %v4832_v1  ;;  %vm732_vm1 = vcmask 523264   ;;  %s5822_s17 = sld [smem:[#allocation34_spill]]  ;;  %vm817_vm2 = vcmask 261120   ;;  %s5823_s3 = sld [smem:[#allocation37_spill]] }
 0x17a   : > { %4115 = vmatprep.subr.bf16.mxu1 %v4830_v0  ;;  %3898 = vmatprep.mubr.msk.f32.mxu1 %vm4831_vm0, %v4832_v1  ;;  %s5770_s28 = smov 64   ;;  %s5771_s20 = smov 96   ;;  %vm895_vm3 = vcmask 64512   ;;  %v1057_v39 = vld [vmem:[#allocation5] sm:$0xff]  ;;  %v1304_v63 = vld [vmem:[#allocation5 + $0x8] sm:$0xff] }
 0x17b   : > { %s5769_s22 = smov 88   ;;  %s5767_s2 = smov 56  }
 0x17c   : > { %s5766_s7 = smov 80   ;;  %s5768_s30 = smov 120  }
 0x17d   : > { %s5765_s23 = smov 112   ;;  %s5763_s6 = smov 72  }
 0x17e   : > { %v723_v2 = vld [vmem:[%s5820_s4] sm:$0xff]  ;;  %v724_v3 = vld [vmem:[%s5820_s4 + $0x8] sm:$0xff]  ;;  %v725_v4 = vld [vmem:[%s5820_s4 + $0x10] sm:$0xff]  ;;  %s5761_s5 = smov 104   ;;  %p5838_p3 = scmp.ne.s32.totalorder %s5801_s11, 0 }
 0x17f   : > { %v4104_v5 = vpack.c.bf16 %v724_v3, %v723_v2  ;;  %v726_v6 = vld [vmem:[%s5820_s4 + $0x18] sm:$0xff]  ;;  %v806_v8 = vld [vmem:[%s5821_s8] sm:$0xff]  ;;  %v807_v9 = vld [vmem:[%s5821_s8 + $0x8] sm:$0xff] }
 0x180   : > { %v4107_v7 = vpack.c.bf16 %v726_v6, %v725_v4  ;;  %v727_v10 = vld [vmem:[%s5820_s4 + $0x20] sm:$0xff]  ;;  %v728_v11 = vld [vmem:[%s5820_s4 + $0x28] sm:$0xff]  ;;  %v4116_v12 = vpack.c.bf16 %v807_v9, %v806_v8  ;;  %v729_v14 = vld [vmem:[%s5820_s4 + $0x30] sm:$0xff] }
 0x181   : > { %4105 = vmatpush3.bf16.msra.mxu0 %v4104_v5  ;;  %v4110_v13 = vpack.c.bf16 %v728_v11, %v727_v10  ;;  %v730_v15 = vld [vmem:[%s5820_s4 + $0x38] sm:$0xff]  ;;  %v808_v18 = vld [vmem:[%s5821_s8 + $0x10] sm:$0xff]  ;;  %v731_v21 = vld [vmem:[%s5822_s17] sm:$0xff]  ;;  %s5764_s17 = smov 48  }
 0x182   : > { %4106 = vmatprep.subr.bf16.mxu0 %v4830_v0  ;;  %4117 = vmatpush3.bf16.msra.mxu1 %v4116_v12  ;;  %v4113_v16 = vpack.c.bf16 %v730_v15, %v729_v14  ;;  %v809_v19 = vld [vmem:[%s5821_s8 + $0x18] sm:$0xff]  ;;  %v3698_v25 = vld [vmem:[%s5823_s3] ss:$0 sm:$0xff] }
 0x183   : > { %4118 = vmatprep.subr.bf16.mxu1 %v4830_v0  ;;  %v4119_v20 = vpack.c.bf16 %v809_v19, %v808_v18 }
 0x185   : > { %4108 = vmatpush3.bf16.msra.mxu0 %v4107_v7 }
 0x186   : > { %4109 = vmatprep.subr.bf16.mxu0 %v4830_v0  ;;  %4120 = vmatpush3.bf16.msra.mxu1 %v4119_v20 }
 0x187   : > { %3901 = vmatprep.subr.mxu1 %v4832_v1 }
 0x189   : > { %4111 = vmatpush3.bf16.msra.mxu0 %v4110_v13  ;;  %v3704_v13 = vld [vmem:[#allocation7] ss:$0 sm:$0xff] }
 0x18a   : > { %4112 = vmatprep.subr.bf16.mxu0 %v4830_v0 }
 0x18d   : > { %4114 = vmatpush3.bf16.msra.mxu0 %v4113_v16 }
 0x18e   : > { %3911 = vmatprep.subr.mxu0 %v4832_v1 }
 0x190   : > { %3888 = vmatmul.mubr.msk.f32.vlgmr.msra.gmra.mrb[0].mxu0 %vm732_vm1, %v722_v17 }
 0x191   : > { %3913 = vmatprep.mubr.msk.f32.mxu0 %vm4831_vm0, %v4832_v1  ;;  %3912 = vmatpush3.msra.mxu0 %v1057_v39 }
 0x192   : > { %3921 = vmatprep.subr.mxu0 %v4832_v1 }
 0x263   : > { %v802_v22 = vpop.f32.mrb[0].mxu0 }
 0x264   : > { %v5388_v23 = vadd.f32 %v802_v22, %v731_v21  ;;  %v3889_v24 = vpop.f32.mrb[1].mxu0 }
 0x265   : > { %v1545_v24 = vld [vmem:[#allocation5 + $0x10] sm:$0xff] }
 0x266   : > { %3899 = vmatmul.mubr.msk.f32.vlgmr.msra.gmra.mrb[0].mxu1 %vm817_vm2, %v5388_v23 }
 0x267   : > { %3903 = vmatprep.mubr.msk.f32.mxu1 %vm4831_vm0, %v4832_v1 }
 0x339   : > { %v887_v26 = vpop.f32.mrb[0].mxu1 }
 0x33a   : > { %v5397_v27 = vadd.f32 %v3698_v25, %v887_v26  ;;  %v3900_v28 = vpop.f32.mrb[1].mxu1 }
 0x33c   : > { %981 = vrot.lane.b32.xlu1 %v5397_v27, %s5770_s28  ;;  %893 = vrot.lane.b32.xlu0 %v5397_v27, %s5771_s20  ;;  %s5829_s28 = smov 56   ;;  %s5830_s20 = smov 80  }
 0x340   : > { %1140 = vrot.lane.b32.xlu1 %v5397_v27, %s5769_s22  ;;  %s5831_s22 = smov 112  }
 0x3ae   : > { %v894_v29 = vpop.permute.xlu0 %893  ;;  %v982_v30 = vpop.permute.xlu1 %981 }
 0x3af   : > { %3902 = vmatpush3.xpose.msk.msra.mxu1 %vm895_vm3, %v894_v29 }
 0x3b0   : > { %3906 = vmatprep.subr.mxu1 %v4832_v1 }
 0x3b2   : > { %3904 = vmatmul.mubr.msk.f32.vlgmr.msra.gmra.mrb[2].mxu1 %vm895_vm3, %v5397_v27  ;;  %v1141_v40 = vpop.permute.xlu1 %1140 }
 0x3b3   : > { %3907 = vmatpush3.msra.mxu1 %v982_v30  ;;  %3908 = vmatprep.mubr.msk.f32.mxu1 %vm4831_vm0, %v4832_v1 }
 0x3b4   : > { %3916 = vmatprep.subr.mxu1 %v4832_v1 }
 0x485   : > { %v966_v31 = vpop.f32.mrb[2].mxu1 }
 0x486   : > { %v3905_v32 = vpop.f32.mrb[3].mxu1  ;;  %v970_v33 = vsel %vm895_vm3, %v966_v31, -inf }
 0x487   : > { %971 = vmax.xlane.f32.xlu0 %v970_v33 }
 0x49d   : > { %1227 = vrot.lane.b32.xlu0 %v5397_v27, %s5767_s2  ;;  %s5832_s2 = smov 48  }
 0x4a1   : > { %1381 = vrot.lane.b32.xlu0 %v5397_v27, %s5766_s7  ;;  %s5828_s7 = smov 120  }
 0x514   : > { %v972_v34 = vpop.xlane.xlu0 %971 }
 0x515   : > { %v973_v35 = vsub.f32 %v966_v31, %v972_v34 }
 0x517   : > { %v974_v36 = vmul.f32 1.442695, %v973_v35 }
 0x518   : > { %v1228_v46 = vpop.permute.xlu0 %1227 }
 0x519   : > { %4344 = vpow2.f32 %v974_v36  ;;  %v1786_v36 = vld [vmem:[#allocation5 + $0x18] sm:$0xff] }
 0x51c   : > { %v1382_v58 = vpop.permute.xlu0 %1381 }
 0x523   : > { %v4345_v37 = vpop.eup %4344 }
 0x524   : > { %v976_v38 = vsel %vm895_vm3, %v4345_v37, 0.0 }
 0x525   : > { %977 = vadd.xlane.f32.xlu1 %v976_v38 }
 0x536   : > { %1138 = vrot.lane.b32.xlu1 %v5397_v27, %s5768_s30  ;;  %s5833_s30 = smov 72  }
 0x5b2   : > { %v978_v41 = vpop.xlane.xlu1 %977 }
 0x5b3   : > { %4346 = vrcp.f32 %v978_v41 }
 0x5b6   : > { %v1139_v44 = vpop.permute.xlu1 %1138 }
 0x5bd   : > { %v4347_v42 = vpop.eup %4346 }
 0x5be   : > { %v980_v43 = vmul.f32 %v4347_v42, %v4345_v37 }
 0x5c0   : > { %3909 = vmatmul.mubr.msk.f32.vlgmr.msra.gmra.mrb[4].mxu1 %vm895_vm3, %v980_v43 }
 0x5c1   : > { %3917 = vmatpush3.xpose.msk.msra.mxu1 %vm895_vm3, %v1141_v40  ;;  %3918 = vmatprep.mubr.msk.f32.mxu1 %vm4831_vm0, %v4832_v1 }
 0x5c2   : > { %3926 = vmatprep.subr.mxu1 %v4832_v1 }
 0x5c4   : > { %3919 = vmatmul.mubr.msk.f32.vlgmr.msra.gmra.mrb[6].mxu1 %vm895_vm3, %v1139_v44 }
 0x5c5   : > { %3928 = vmatprep.mubr.msk.f32.mxu1 %vm4831_vm0, %v4832_v1  ;;  %3927 = vmatpush3.msra.mxu1 %v1304_v63 }
 0x5c6   : > { %3936 = vmatprep.subr.mxu1 %v4832_v1 }
 0x693   : > { %v1053_v45 = vpop.f32.mrb[4].mxu1 }
 0x694   : > { %v3910_v47 = vpop.f32.mrb[5].mxu1  ;;  %3914 = vmatmul.mubr.msk.f32.vlgmr.msra.gmra.mrb[2].mxu0 %vm895_vm3, %v1053_v45 }
 0x695   : > { %3922 = vmatpush3.msra.mxu0 %v1228_v46  ;;  %3923 = vmatprep.mubr.msk.f32.mxu0 %vm4831_vm0, %v4832_v1 }
 0x696   : > { %3931 = vmatprep.subr.mxu0 %v4832_v1 }
 0x697   : > { %v1212_v48 = vpop.f32.mrb[6].mxu1 }
 0x698   : > { %v3920_v49 = vpop.f32.mrb[7].mxu1  ;;  %v1216_v50 = vsel %vm895_vm3, %v1212_v48, -inf }
 0x699   : > { %1217 = vmax.xlane.f32.xlu1 %v1216_v50 }
 0x726   : > { %v1218_v51 = vpop.xlane.xlu1 %1217 }
 0x727   : > { %v1219_v52 = vsub.f32 %v1212_v48, %v1218_v51 }
 0x729   : > { %v1220_v53 = vmul.f32 1.442695, %v1219_v52 }
 0x72b   : > { %4348 = vpow2.f32 %v1220_v53 }
 0x735   : > { %v4349_v54 = vpop.eup %4348 }
 0x736   : > { %v1222_v55 = vsel %vm895_vm3, %v4349_v54, 0.0 }
 0x737   : > { %1223 = vadd.xlane.f32.xlu0 %v1222_v55  ;;  %v1892_v55 = vld [vmem:[#allocation11] sm:$0xff] }
 0x74d   : > { %1379 = vrot.lane.b32.xlu0 %v5397_v27, %s5765_s23  ;;  %s5825_s23 = smov 96  }
 0x767   : > { %v1127_v56 = vpop.f32.mrb[2].mxu0 }
 0x768   : > { %v3915_v57 = vpop.f32.mrb[3].mxu0  ;;  %v1137_v14 = vadd.f32 %v3704_v13, %v1127_v56  ;;  %v1893_v56 = vld [vmem:[#allocation11 + $0x8] sm:$0xff]  ;;  %v3718_v13 = vld [vmem:[#allocation10] ss:$0 sm:$0xff] }
 0x769   : > { %v4122_v57 = vpack.c.bf16 %v1893_v56, %v1892_v55 }
 0x7c4   : > { %v1224_v59 = vpop.xlane.xlu0 %1223 }
 0x7c5   : > { %4350 = vrcp.f32 %v1224_v59  ;;  %v1895_v59 = vld [vmem:[#allocation11 + $0x18] sm:$0xff] }
 0x7c8   : > { %v1380_v62 = vpop.permute.xlu0 %1379 }
 0x7cf   : > { %v4351_v60 = vpop.eup %4350 }
 0x7d0   : > { %v1226_v61 = vmul.f32 %v4351_v60, %v4349_v54 }
 0x7d2   : > { %3924 = vmatmul.mubr.msk.f32.vlgmr.msra.gmra.mrb[4].mxu0 %vm895_vm3, %v1226_v61 }
 0x7d3   : > { %3932 = vmatpush3.xpose.msk.msra.mxu0 %vm895_vm3, %v1382_v58  ;;  %3933 = vmatprep.mubr.msk.f32.mxu0 %vm4831_vm0, %v4832_v1  ;;  %v1894_v58 = vld [vmem:[#allocation11 + $0x10] sm:$0xff] }
 0x7d4   : > { %3941 = vmatprep.subr.mxu0 %v4832_v1  ;;  %v4125_v60 = vpack.c.bf16 %v1895_v59, %v1894_v58 }
 0x7d6   : > { %3934 = vmatmul.mubr.msk.f32.vlgmr.msra.gmra.mrb[6].mxu0 %vm895_vm3, %v1380_v62 }
 0x7d7   : > { %3943 = vmatprep.mubr.msk.f32.mxu0 %vm4831_vm0, %v4832_v1  ;;  %3942 = vmatpush3.msra.mxu0 %v1545_v24 }
 0x7d8   : > { %3951 = vmatprep.subr.mxu0 %v4832_v1 }
 0x8a5   : > { %v1299_v2 = vpop.f32.mrb[4].mxu0 }
 0x8a6   : > { %v3925_v3 = vpop.f32.mrb[5].mxu0  ;;  %3929 = vmatmul.mubr.msk.f32.vlgmr.msra.gmra.mrb[8].mxu1 %vm895_vm3, %v1299_v2 }
 0x8a7   : > { %3938 = vmatprep.mubr.msk.f32.mxu1 %vm4831_vm0, %v4832_v1 }
 0x8a9   : > { %v1453_v4 = vpop.f32.mrb[6].mxu0 }
 0x8aa   : > { %v3935_v5 = vpop.f32.mrb[7].mxu0  ;;  %v1457_v6 = vsel %vm895_vm3, %v1453_v4, -inf }
 0x8ab   : > { %1458 = vmax.xlane.f32.xlu1 %v1457_v6 }
 0x8bc   : > { %1468 = vrot.lane.b32.xlu1 %v5397_v27, %s5764_s17  ;;  %s5824_s17 = sld [smem:[#allocation42_spill]] }
 0x8c0   : > { %1622 = vrot.lane.b32.xlu1 %v5397_v27, %s5763_s6  ;;  %s5826_s6 = smov 64  }
 0x8c2   : > { %v1978_v61 = vld [vmem:[%s5824_s17 + $0x8] sm:$0xff]  ;;  %v1979_v62 = vld [vmem:[%s5824_s17 + $0x10] sm:$0xff]  ;;  %v1980_v2 = vld [vmem:[%s5824_s17 + $0x18] sm:$0xff] }
 0x8c3   : > { %v4131_v3 = vpack.c.bf16 %v1980_v2, %v1979_v62  ;;  %v1982_v5 = vld [vmem:[%s5824_s17 + $0x28] sm:$0xff]  ;;  %v2348_v2 = vld [vmem:[#allocation5 + $0x20] sm:$0xff] }
 0x8c4   : > { %1620 = vrot.lane.b32.xlu1 %v5397_v27, %s5761_s5  ;;  %s5762_s5 = smov 40  }
 0x938   : > { %v1459_v7 = vpop.xlane.xlu1 %1458 }
 0x939   : > { %v1460_v8 = vsub.f32 %v1453_v4, %v1459_v7  ;;  %v1981_v4 = vld [vmem:[%s5824_s17 + $0x20] sm:$0xff] }
 0x93a   : > { %v4134_v6 = vpack.c.bf16 %v1982_v5, %v1981_v4 }
 0x93b   : > { %v1461_v9 = vmul.f32 1.442695, %v1460_v8 }
 0x93c   : > { %v1469_v10 = vpop.permute.xlu1 %1468 }
 0x93d   : > { %4352 = vpow2.f32 %v1461_v9  ;;  %3937 = vmatpush3.msra.mxu1 %v1469_v10 }
 0x93e   : > { %3946 = vmatprep.subr.mxu1 %v4832_v1 }
 0x940   : > { %v1623_v20 = vpop.permute.xlu1 %1622 }
 0x944   : > { %v1621_v22 = vpop.permute.xlu1 %1620 }
 0x947   : > { %v4353_v11 = vpop.eup %4352 }
 0x948   : > { %v1463_v12 = vsel %vm895_vm3, %v4353_v11, 0.0 }
 0x949   : > { %1464 = vadd.xlane.f32.xlu0 %v1463_v12 }
 0x979   : > { %v1374_v15 = vpop.f32.mrb[8].mxu1 }
 0x97a   : > { %v1378_v16 = vadd.f32 %v1374_v15, %v1137_v14  ;;  %v3930_v17 = vpop.f32.mrb[9].mxu1 }
 0x97b   : > { %v1984_v17 = vld [vmem:[%s5824_s17 + $0x38] sm:$0xff] }
 0x9d6   : > { %v1465_v18 = vpop.xlane.xlu0 %1464 }
 0x9d7   : > { %4354 = vrcp.f32 %v1465_v18 }
 0x9e1   : > { %v4355_v19 = vpop.eup %4354 }
 0x9e2   : > { %v1467_v21 = vmul.f32 %v4355_v19, %v4353_v11  ;;  %v3717_v11 = vld [vmem:[#allocation8] ss:$0 sm:$0xff]  ;;  %v3719_v19 = vld [vmem:[#allocation13] ss:$0 sm:$0xff] }
 0x9e4   : > { %3939 = vmatmul.mubr.msk.f32.vlgmr.msra.gmra.mrb[10].mxu1 %vm895_vm3, %v1467_v21 }
 0x9e5   : > { %3947 = vmatpush3.xpose.msk.msra.mxu1 %vm895_vm3, %v1623_v20  ;;  %3948 = vmatprep.mubr.msk.f32.mxu1 %vm4831_vm0, %v4832_v1 }
 0x9e6   : > { %3956 = vmatprep.subr.mxu1 %v4832_v1 }
 0x9e8   : > { %3949 = vmatmul.mubr.msk.f32.vlgmr.msra.gmra.mrb[12].mxu1 %vm895_vm3, %v1621_v22 }
 0x9e9   : > { %3958 = vmatprep.mubr.msk.f32.mxu1 %vm4831_vm0, %v4832_v1  ;;  %3957 = vmatpush3.msra.mxu1 %v1786_v36 }
 0x9ea   : > { %4127 = vmatprep.subr.bf16.mxu1 %v4830_v0 }
 0xab7   : > { %v1540_v25 = vpop.f32.mrb[10].mxu1 }
 0xab8   : > { %v3940_v26 = vpop.f32.mrb[11].mxu1  ;;  %3944 = vmatmul.mubr.msk.f32.vlgmr.msra.gmra.mrb[8].mxu0 %vm895_vm3, %v1540_v25  ;;  %v3721_v25 = vld [vmem:[#allocation14] ss:$0 sm:$0xff] }
 0xab9   : > { %3953 = vmatprep.mubr.msk.f32.mxu0 %vm4831_vm0, %v4832_v1 }
 0xabb   : > { %v1694_v28 = vpop.f32.mrb[12].mxu1 }
 0xabc   : > { %v3950_v29 = vpop.f32.mrb[13].mxu1  ;;  %v1698_v30 = vsel %vm895_vm3, %v1694_v28, -inf }
 0xabd   : > { %1699 = vmax.xlane.f32.xlu1 %v1698_v30 }
 0xb4a   : > { %v1700_v31 = vpop.xlane.xlu1 %1699 }
 0xb4b   : > { %v1701_v32 = vsub.f32 %v1694_v28, %v1700_v31 }
 0xb4d   : > { %v1702_v33 = vmul.f32 1.442695, %v1701_v32 }
 0xb4f   : > { %4356 = vpow2.f32 %v1702_v33 }
 0xb59   : > { %v4357_v34 = vpop.eup %4356 }
 0xb5a   : > { %v1704_v35 = vsel %vm895_vm3, %v4357_v34, 0.0 }
 0xb5b   : > { %1705 = vadd.xlane.f32.xlu0 %v1704_v35 }
 0xb71   : > { %1709 = vrot.lane.b32.xlu0 %v5397_v27, %s5762_s5  ;;  %s5827_s5 = smov 88  }
 0xb8b   : > { %v1615_v37 = vpop.f32.mrb[8].mxu0 }
 0xb8c   : > { %v1619_v38 = vadd.f32 %v1615_v37, %v1378_v16  ;;  %v3945_v39 = vpop.f32.mrb[9].mxu0  ;;  %v1983_v16 = vld [vmem:[%s5824_s17 + $0x30] sm:$0xff]  ;;  %v3725_v37 = vld [vmem:[%s5821_s8 + $0x20] sm:$0xff] }
 0xb8d   : > { %v4137_v18 = vpack.c.bf16 %v1984_v17, %v1983_v16 }
 0xbe8   : > { %v1706_v40 = vpop.xlane.xlu0 %1705 }
 0xbe9   : > { %4358 = vrcp.f32 %v1706_v40  ;;  %v3727_v40 = vld [vmem:[%s5821_s8 + $0x30] sm:$0xff] }
 0xbec   : > { %v1710_v41 = vpop.permute.xlu0 %1709 }
 0xbed   : > { %3952 = vmatpush3.msra.mxu0 %v1710_v41  ;;  %v3728_v41 = vld [vmem:[%s5821_s8 + $0x38] sm:$0xff] }
 0xbee   : > { %4121 = vmatprep.subr.bf16.mxu0 %v4830_v0 }
 0xbf3   : > { %v4359_v42 = vpop.eup %4358 }
 0xbf4   : > { %v1708_v43 = vmul.f32 %v4359_v42, %v4357_v34  ;;  %v4143_v42 = vpack.c.bf16 %v3728_v41, %v3727_v40  ;;  %v3736_v40 = vld [vmem:[#allocation7 + $0x1] ss:$0 sm:$0xff] }
 0xbf6   : > { %3954 = vmatmul.mubr.msk.f32.vlgmr.msra.gmra.mrb[10].mxu0 %vm895_vm3, %v1708_v43 }
 0xbf7   : > { %3969 = vmatprep.mubr.msk.f32.mxu0 %vm4831_vm0, %v4832_v1  ;;  %4123 = vmatpush3.bf16.msra.mxu0 %v4122_v57 }
 0xbf8   : > { %4124 = vmatprep.subr.bf16.mxu0 %v4830_v0 }
 0xbfb   : > { %4126 = vmatpush3.bf16.msra.mxu0 %v4125_v60 }
 0xbfc   : > { %4139 = vmatprep.subr.bf16.mxu0 %v4830_v0 }
 0xcc9   : > { %v1781_v27 = vpop.f32.mrb[10].mxu0 }
 0xcca   : > { %v3955_v44 = vpop.f32.mrb[11].mxu0  ;;  %3959 = vmatmul.mubr.msk.f32.vlgmr.msra.gmra.mrb[14].mxu1 %vm895_vm3, %v1781_v27 }
 0xccb   : > { %3988 = vmatprep.mubr.msk.f32.mxu1 %vm4831_vm0, %v4832_v1 }
 0xd9d   : > { %v1856_v45 = vpop.f32.mrb[14].mxu1 }
 0xd9e   : > { %v1860_v46 = vadd.f32 %v1856_v45, %v1619_v38  ;;  %v3960_v47 = vpop.f32.mrb[15].mxu1  ;;  %v3726_v38 = vld [vmem:[%s5821_s8 + $0x28] sm:$0xff] }
 0xd9f   : > { %v4140_v39 = vpack.c.bf16 %v3726_v38, %v3725_v37 }
 0xda0   : > { %v1861_v48 = vadd.f32 %v1860_v46, %v5388_v23  ;;  %v1977_v23 = vld [vmem:[%s5824_s17] sm:$0xff]  ;;  %v3723_v46 = vld [vmem:[#allocation16] ss:$0 sm:$0xff] }
 0xda1   : > { %v4128_v63 = vpack.c.bf16 %v1978_v61, %v1977_v23 }
 0xda2   : > { %v1864_v49 = vsel %vm817_vm2, %v1861_v48, 0.0 }
 0xda3   : > { %1865 = vadd.xlane.f32.xlu0 %v1864_v49  ;;  %4129 = vmatpush3.bf16.msra.mxu1 %v4128_v63 }
 0xda4   : > { %4130 = vmatprep.subr.bf16.mxu1 %v4830_v0 }
 0xda7   : > { %4132 = vmatpush3.bf16.msra.mxu1 %v4131_v3 }
 0xda8   : > { %4133 = vmatprep.subr.bf16.mxu1 %v4830_v0 }
 0xdab   : > { %4135 = vmatpush3.bf16.msra.mxu1 %v4134_v6 }
 0xdac   : > { %4136 = vmatprep.subr.bf16.mxu1 %v4830_v0 }
 0xdaf   : > { %4138 = vmatpush3.bf16.msra.mxu1 %v4137_v18 }
 0xdb0   : > { %4007 = vmatprep.subr.mxu1 %v4832_v1 }
 0xe30   : > { %v1866_v50 = vpop.xlane.xlu0 %1865 }
 0xe31   : > { %v1868_v51 = vmul.f32 0.03125, %v1866_v50 }
 0xe33   : > { %v1869_v52 = vsub.f32 %v1861_v48, %v1868_v51  ;;  %v3724_v48 = vld [vmem:[#allocation17] ss:$0 sm:$0xff]  ;;  %v3730_v51 = vld [vmem:[%s5823_s3 + $0x1] ss:$0 sm:$0xff] }
 0xe35   : > { %v1870_v53 = vmul.f32 %v1869_v52, %v1869_v52 }
 0xe37   : > { %v1871_v54 = vsel %vm817_vm2, %v1870_v53, 0.0 }
 0xe38   : > { %1872 = vadd.xlane.f32.xlu1 %v1871_v54 }
 0xec5   : > { %v1873_v7 = vpop.xlane.xlu1 %1872 }
 0xec6   : > { %v1874_v8 = vmul.f32 0.03125, %v1873_v7 }
 0xec8   : > { %v1875_v9 = vadd.f32 1e-05, %v1874_v8 }
 0xeca   : > { %4360 = vrsqrt.f32 %v1875_v9 }
 0xed4   : > { %v4361_v10 = vpop.eup %4360 }
 0xed5   : > { %v1877_v12 = vmul.f32 %v4361_v10, %v1869_v52 }
 0xed7   : > { %v1884_v14 = vmul.f32 %v3717_v11, %v1877_v12 }
 0xed9   : > { %v1891_v15 = vadd.f32 %v3718_v13, %v1884_v14 }
 0xedb   : > { %3970 = vmatmul.mubr.msk.f32.vlgmr.msra.gmra.mrb[12].mxu0 %vm817_vm2, %v1891_v15 }
 0xedc   : > { %3999 = vmatprep.mubr.msk.f32.mxu0 %vm4831_vm0, %v4832_v1  ;;  %4141 = vmatpush3.bf16.msra.mxu0 %v4140_v39 }
 0xedd   : > { %4142 = vmatprep.subr.bf16.mxu0 %v4830_v0 }
 0xee0   : > { %4144 = vmatpush3.bf16.msra.mxu0 %v4143_v42 }
 0xee1   : > { %4002 = vmatprep.subr.mxu0 %v4832_v1 }
 0xfae   : > { %v1972_v20 = vpop.f32.mrb[12].mxu0 }
 0xfaf   : > { %v1973_v21 = vadd.f32 %v3719_v19, %v1972_v20  ;;  %v3971_v22 = vpop.f32.mrb[13].mxu0 }
 0xfb1   : > { %v1976_v24 = vmax.f32 %v1973_v21, 0.0 }
 0xfb3   : > { %3989 = vmatmul.mubr.msk.f32.vlgmr.msra.gmra.mrb[16].mxu1 %vm732_vm1, %v1976_v24 }
 0xfb4   : > { %4009 = vmatprep.mubr.msk.f32.mxu1 %vm4831_vm0, %v4832_v1 }
0x1086   : > { %v2061_v26 = vpop.f32.mrb[16].mxu1 }
0x1087   : > { %v2062_v28 = vadd.f32 %v3721_v25, %v2061_v26  ;;  %v3990_v29 = vpop.f32.mrb[17].mxu1 }
0x1089   : > { %v2065_v30 = vadd.f32 %v2062_v28, %v1891_v15  ;;  %v2595_v28 = vld [vmem:[#allocation5 + $0x28] sm:$0xff] }
0x108b   : > { %v2068_v31 = vsel %vm817_vm2, %v2065_v30, 0.0 }
0x108c   : > { %2069 = vadd.xlane.f32.xlu1 %v2068_v31 }
0x1119   : > { %v2070_v32 = vpop.xlane.xlu1 %2069 }
0x111a   : > { %v2071_v33 = vmul.f32 0.03125, %v2070_v32 }
0x111c   : > { %v2072_v34 = vsub.f32 %v2065_v30, %v2071_v33 }
0x111e   : > { %v2073_v35 = vmul.f32 %v2072_v34, %v2072_v34 }
0x1120   : > { %v2074_v36 = vsel %vm817_vm2, %v2073_v35, 0.0 }
0x1121   : > { %2075 = vadd.xlane.f32.xlu1 %v2074_v36 }
0x11ae   : > { %v2076_v43 = vpop.xlane.xlu1 %2075 }
0x11af   : > { %v2077_v27 = vmul.f32 0.03125, %v2076_v43 }
0x11b1   : > { %v2078_v44 = vadd.f32 1e-05, %v2077_v27 }
0x11b3   : > { %4362 = vrsqrt.f32 %v2078_v44 }
0x11bd   : > { %v4363_v45 = vpop.eup %4362 }
0x11be   : > { %v2080_v47 = vmul.f32 %v4363_v45, %v2072_v34 }
0x11c0   : > { %v2087_v49 = vmul.f32 %v3723_v46, %v2080_v47 }
0x11c2   : > { %v5537_v50 = vadd.f32 %v3724_v48, %v2087_v49  ;;  %v2836_v49 = vld [vmem:[#allocation5 + $0x30] sm:$0xff] }
0x11c4   : > { %4000 = vmatmul.mubr.msk.f32.vlgmr.msra.gmra.mrb[14].mxu0 %vm817_vm2, %v5537_v50 }
0x11c5   : > { %4004 = vmatprep.mubr.msk.f32.mxu0 %vm4831_vm0, %v4832_v1 }
0x1297   : > { %v2177_v52 = vpop.f32.mrb[14].mxu0 }
0x1298   : > { %v5546_v53 = vadd.f32 %v3730_v51, %v2177_v52  ;;  %v4001_v54 = vpop.f32.mrb[15].mxu0 }
0x129a   : > { %2184 = vrot.lane.b32.xlu1 %v5546_v53, %s5825_s23  ;;  %s5834_s23 = smov 104  }
0x130c   : > { %v2185_v55 = vpop.permute.xlu1 %2184 }
0x130d   : > { %4003 = vmatpush3.xpose.msk.msra.mxu0 %vm895_vm3, %v2185_v55 }
0x130e   : > { %4012 = vmatprep.subr.mxu0 %v4832_v1 }
0x1310   : > { %4005 = vmatmul.mubr.msk.f32.vlgmr.msra.gmra.mrb[16].mxu0 %vm895_vm3, %v5546_v53 }
0x1311   : > { %4014 = vmatprep.mubr.msk.f32.mxu0 %vm4831_vm0, %v4832_v1  ;;  %4013 = vmatpush3.msra.mxu0 %v2348_v2 }
0x1312   : > { %4022 = vmatprep.subr.mxu0 %v4832_v1 }
0x13e3   : > { %v2256_v56 = vpop.f32.mrb[16].mxu0 }
0x13e4   : > { %v4006_v57 = vpop.f32.mrb[17].mxu0  ;;  %v2260_v58 = vsel %vm895_vm3, %v2256_v56, -inf }
0x13e5   : > { %2261 = vmax.xlane.f32.xlu0 %v2260_v58 }
0x13fb   : > { %2271 = vrot.lane.b32.xlu0 %v5546_v53, %s5826_s6  ;;  %s5835_s6 = smov 40  }
0x13ff   : > { %2431 = vrot.lane.b32.xlu0 %v5546_v53, %s5827_s5 }
0x1403   : > { %2429 = vrot.lane.b32.xlu0 %v5546_v53, %s5828_s7 }
0x1472   : > { %v2262_v59 = vpop.xlane.xlu0 %2261 }
0x1473   : > { %v2263_v60 = vsub.f32 %v2256_v56, %v2262_v59 }
0x1475   : > { %v2264_v23 = vmul.f32 1.442695, %v2263_v60 }
0x1476   : > { %v2272_v61 = vpop.permute.xlu0 %2271 }
0x1477   : > { %4364 = vpow2.f32 %v2264_v23  ;;  %4008 = vmatpush3.msra.mxu1 %v2272_v61  ;;  %v3077_v61 = vld [vmem:[#allocation5 + $0x38] sm:$0xff] }
0x1478   : > { %4017 = vmatprep.subr.mxu1 %v4832_v1 }
0x147a   : > { %v2432_v5 = vpop.permute.xlu0 %2431 }
0x147e   : > { %v2430_v7 = vpop.permute.xlu0 %2429 }
0x1481   : > { %v4365_v62 = vpop.eup %4364 }
0x1482   : > { %v2266_v63 = vsel %vm895_vm3, %v4365_v62, 0.0 }
0x1483   : > { %2267 = vadd.xlane.f32.xlu1 %v2266_v63 }
0x1494   : > { %2518 = vrot.lane.b32.xlu1 %v5546_v53, %s5829_s28 }
0x1498   : > { %2672 = vrot.lane.b32.xlu1 %v5546_v53, %s5830_s20 }
0x1510   : > { %v2268_v3 = vpop.xlane.xlu1 %2267 }
0x1511   : > { %4366 = vrcp.f32 %v2268_v3 }
0x1514   : > { %v2519_v9 = vpop.permute.xlu1 %2518 }
0x1518   : > { %v2673_v21 = vpop.permute.xlu1 %2672 }
0x151b   : > { %v4367_v4 = vpop.eup %4366 }
0x151c   : > { %v2270_v6 = vmul.f32 %v4367_v4, %v4365_v62 }
0x151e   : > { %4010 = vmatmul.mubr.msk.f32.vlgmr.msra.gmra.mrb[18].mxu1 %vm895_vm3, %v2270_v6 }
0x151f   : > { %4018 = vmatpush3.xpose.msk.msra.mxu1 %vm895_vm3, %v2432_v5  ;;  %4019 = vmatprep.mubr.msk.f32.mxu1 %vm4831_vm0, %v4832_v1 }
0x1520   : > { %4027 = vmatprep.subr.mxu1 %v4832_v1 }
0x1522   : > { %4020 = vmatmul.mubr.msk.f32.vlgmr.msra.gmra.mrb[20].mxu1 %vm895_vm3, %v2430_v7 }
0x1523   : > { %4029 = vmatprep.mubr.msk.f32.mxu1 %vm4831_vm0, %v4832_v1  ;;  %4028 = vmatpush3.msra.mxu1 %v2595_v28 }
0x1524   : > { %4037 = vmatprep.subr.mxu1 %v4832_v1 }
0x15f1   : > { %v2343_v8 = vpop.f32.mrb[18].mxu1 }
0x15f2   : > { %v4011_v10 = vpop.f32.mrb[19].mxu1  ;;  %4015 = vmatmul.mubr.msk.f32.vlgmr.msra.gmra.mrb[18].mxu0 %vm895_vm3, %v2343_v8 }
0x15f3   : > { %4023 = vmatpush3.msra.mxu0 %v2519_v9  ;;  %4024 = vmatprep.mubr.msk.f32.mxu0 %vm4831_vm0, %v4832_v1 }
0x15f4   : > { %4032 = vmatprep.subr.mxu0 %v4832_v1 }
0x15f5   : > { %v2503_v11 = vpop.f32.mrb[20].mxu1 }
0x15f6   : > { %v4021_v12 = vpop.f32.mrb[21].mxu1  ;;  %v2507_v13 = vsel %vm895_vm3, %v2503_v11, -inf }
0x15f7   : > { %2508 = vmax.xlane.f32.xlu0 %v2507_v13 }
0x1684   : > { %v2509_v14 = vpop.xlane.xlu0 %2508 }
0x1685   : > { %v2510_v15 = vsub.f32 %v2503_v11, %v2509_v14 }
0x1687   : > { %v2511_v16 = vmul.f32 1.442695, %v2510_v15 }
0x1689   : > { %4368 = vpow2.f32 %v2511_v16 }
0x1693   : > { %v4369_v17 = vpop.eup %4368 }
0x1694   : > { %v2513_v18 = vsel %vm895_vm3, %v4369_v17, 0.0 }
0x1695   : > { %2514 = vadd.xlane.f32.xlu1 %v2513_v18  ;;  %v3185_v18 = vld [vmem:[#allocation11 + $0x20] sm:$0xff] }
0x16a6   : > { %2670 = vrot.lane.b32.xlu1 %v5546_v53, %s5831_s22  ;;  %s5837_s22 = sld [smem:[#allocation43_spill]] }
0x16c5   : > { %v2418_v19 = vpop.f32.mrb[18].mxu0 }
0x16c6   : > { %v4016_v20 = vpop.f32.mrb[19].mxu0  ;;  %v2428_v41 = vadd.f32 %v3736_v40, %v2418_v19  ;;  %v3186_v19 = vld [vmem:[#allocation11 + $0x28] sm:$0xff]  ;;  %v3750_v40 = vld [vmem:[#allocation10 + $0x1] ss:$0 sm:$0xff] }
0x16c7   : > { %v4146_v20 = vpack.c.bf16 %v3186_v19, %v3185_v18 }
0x1722   : > { %v2515_v22 = vpop.xlane.xlu1 %2514 }
0x1723   : > { %4370 = vrcp.f32 %v2515_v22  ;;  %v3188_v22 = vld [vmem:[#allocation11 + $0x38] sm:$0xff] }
0x1726   : > { %v2671_v26 = vpop.permute.xlu1 %2670 }
0x172d   : > { %v4371_v24 = vpop.eup %4370 }
0x172e   : > { %v2517_v25 = vmul.f32 %v4371_v24, %v4369_v17 }
0x1730   : > { %4025 = vmatmul.mubr.msk.f32.vlgmr.msra.gmra.mrb[20].mxu0 %vm895_vm3, %v2517_v25  ;;  %v3754_v25 = vld [vmem:[%s5824_s17 + $0x48] sm:$0xff] }
0x1731   : > { %4033 = vmatpush3.xpose.msk.msra.mxu0 %vm895_vm3, %v2673_v21  ;;  %4034 = vmatprep.mubr.msk.f32.mxu0 %vm4831_vm0, %v4832_v1  ;;  %v3187_v21 = vld [vmem:[#allocation11 + $0x30] sm:$0xff] }
0x1732   : > { %4042 = vmatprep.subr.mxu0 %v4832_v1  ;;  %v4149_v24 = vpack.c.bf16 %v3188_v22, %v3187_v21 }
0x1734   : > { %4035 = vmatmul.mubr.msk.f32.vlgmr.msra.gmra.mrb[22].mxu0 %vm895_vm3, %v2671_v26  ;;  %v3755_v26 = vld [vmem:[%s5824_s17 + $0x50] sm:$0xff] }
0x1735   : > { %4044 = vmatprep.mubr.msk.f32.mxu0 %vm4831_vm0, %v4832_v1  ;;  %4043 = vmatpush3.msra.mxu0 %v2836_v49 }
0x1736   : > { %4052 = vmatprep.subr.mxu0 %v4832_v1 }
0x1803   : > { %v2590_v29 = vpop.f32.mrb[20].mxu0 }
0x1804   : > { %v4026_v30 = vpop.f32.mrb[21].mxu0  ;;  %4030 = vmatmul.mubr.msk.f32.vlgmr.msra.gmra.mrb[22].mxu1 %vm895_vm3, %v2590_v29  ;;  %v3756_v29 = vld [vmem:[%s5824_s17 + $0x58] sm:$0xff] }
0x1805   : > { %4039 = vmatprep.mubr.msk.f32.mxu1 %vm4831_vm0, %v4832_v1  ;;  %v4155_v30 = vpack.c.bf16 %v3756_v29, %v3755_v26 }
0x1807   : > { %v2744_v31 = vpop.f32.mrb[22].mxu0 }
0x1808   : > { %v4036_v32 = vpop.f32.mrb[23].mxu0  ;;  %v2748_v33 = vsel %vm895_vm3, %v2744_v31, -inf }
0x1809   : > { %2749 = vmax.xlane.f32.xlu0 %v2748_v33  ;;  %v3758_v32 = vld [vmem:[%s5824_s17 + $0x68] sm:$0xff] }
0x181f   : > { %2759 = vrot.lane.b32.xlu0 %v5546_v53, %s5832_s2 }
0x1823   : > { %2913 = vrot.lane.b32.xlu0 %v5546_v53, %s5833_s30  ;;  %s3479_s30 = scalar_lea.sflag [#allocation4], %s5297_s21 }
0x1827   : > { %2911 = vrot.lane.b32.xlu0 %v5546_v53, %s5834_s23  ;;  %s3768_s23 = sshll.u32 %s5807_s1, 7 }
0x1828   : > { %s5677_s2 = scalar_lea.hbm %s5837_s22, %s3768_s23 }
0x1896   : > { %v2750_v34 = vpop.xlane.xlu0 %2749 }
0x1897   : > { %v2751_v35 = vsub.f32 %v2744_v31, %v2750_v34  ;;  %v3757_v31 = vld [vmem:[%s5824_s17 + $0x60] sm:$0xff] }
0x1898   : > { %v4158_v33 = vpack.c.bf16 %v3758_v32, %v3757_v31 }
0x1899   : > { %v2752_v36 = vmul.f32 1.442695, %v2751_v35 }
0x189a   : > { %v2760_v37 = vpop.permute.xlu0 %2759 }
0x189b   : > { %4372 = vpow2.f32 %v2752_v36  ;;  %4038 = vmatpush3.msra.mxu1 %v2760_v37 }
0x189c   : > { %4047 = vmatprep.subr.mxu1 %v4832_v1 }
0x189e   : > { %v2914_v46 = vpop.permute.xlu0 %2913 }
0x18a2   : > { %v2912_v48 = vpop.permute.xlu0 %2911 }
0x18a5   : > { %v4373_v38 = vpop.eup %4372 }
0x18a6   : > { %v2754_v39 = vsel %vm895_vm3, %v4373_v38, 0.0 }
0x18a7   : > { %2755 = vadd.xlane.f32.xlu1 %v2754_v39 }
0x18d7   : > { %v2665_v42 = vpop.f32.mrb[22].mxu1 }
0x18d8   : > { %v2669_v43 = vadd.f32 %v2665_v42, %v2428_v41  ;;  %v4031_v27 = vpop.f32.mrb[23].mxu1 }
0x18d9   : > { %v3760_v27 = vld [vmem:[%s5824_s17 + $0x78] sm:$0xff] }
0x1934   : > { %v2756_v44 = vpop.xlane.xlu1 %2755 }
0x1935   : > { %4374 = vrcp.f32 %v2756_v44 }
0x193f   : > { %v4375_v45 = vpop.eup %4374 }
0x1940   : > { %v2758_v47 = vmul.f32 %v4375_v45, %v4373_v38  ;;  %v3749_v38 = vld [vmem:[#allocation8 + $0x1] ss:$0 sm:$0xff]  ;;  %v3751_v45 = vld [vmem:[#allocation13 + $0x1] ss:$0 sm:$0xff] }
0x1942   : > { %4040 = vmatmul.mubr.msk.f32.vlgmr.msra.gmra.mrb[24].mxu1 %vm895_vm3, %v2758_v47 }
0x1943   : > { %4048 = vmatpush3.xpose.msk.msra.mxu1 %vm895_vm3, %v2914_v46  ;;  %4049 = vmatprep.mubr.msk.f32.mxu1 %vm4831_vm0, %v4832_v1 }
0x1944   : > { %4057 = vmatprep.subr.mxu1 %v4832_v1 }
0x1946   : > { %4050 = vmatmul.mubr.msk.f32.vlgmr.msra.gmra.mrb[26].mxu1 %vm895_vm3, %v2912_v48 }
0x1947   : > { %4059 = vmatprep.mubr.msk.f32.mxu1 %vm4831_vm0, %v4832_v1  ;;  %4058 = vmatpush3.msra.mxu1 %v3077_v61  ;;  %v3393_v61 = vld [vmem:[#allocation19] sm:$0xff] }
0x1948   : > { %4151 = vmatprep.subr.bf16.mxu1 %v4830_v0 }
0x1a15   : > { %v2831_v51 = vpop.f32.mrb[24].mxu1 }
0x1a16   : > { %v4041_v52 = vpop.f32.mrb[25].mxu1  ;;  %4045 = vmatmul.mubr.msk.f32.vlgmr.msra.gmra.mrb[24].mxu0 %vm895_vm3, %v2831_v51  ;;  %v3761_v51 = vld [vmem:[#allocation14 + $0x1] ss:$0 sm:$0xff] }
0x1a17   : > { %4054 = vmatprep.mubr.msk.f32.mxu0 %vm4831_vm0, %v4832_v1 }
0x1a19   : > { %v2985_v54 = vpop.f32.mrb[26].mxu1 }
0x1a1a   : > { %v4051_v55 = vpop.f32.mrb[27].mxu1  ;;  %v2989_v56 = vsel %vm895_vm3, %v2985_v54, -inf }
0x1a1b   : > { %2990 = vmax.xlane.f32.xlu0 %v2989_v56 }
0x1aa8   : > { %v2991_v57 = vpop.xlane.xlu0 %2990 }
0x1aa9   : > { %v2992_v58 = vsub.f32 %v2985_v54, %v2991_v57 }
0x1aab   : > { %v2993_v59 = vmul.f32 1.442695, %v2992_v58 }
0x1aad   : > { %4376 = vpow2.f32 %v2993_v59 }
0x1ab7   : > { %v4377_v60 = vpop.eup %4376 }
0x1ab8   : > { %v2995_v23 = vsel %vm895_vm3, %v4377_v60, 0.0 }
0x1ab9   : > { %2996 = vadd.xlane.f32.xlu1 %v2995_v23 }
0x1aca   : > { %3000 = vrot.lane.b32.xlu1 %v5546_v53, %s5835_s6  ;;  %s5836_s6 = sshll.u32 %s5297_s21, 3 }
0x1acb   : > { %s721_s5 = scalar_lea.vmem [#allocation22], %s5836_s6  ;;  %s4844_s6 = smov [#allocation22]  }
0x1acc   : > { %s3492_s7 = sshll.u32 %s721_s5, 4  ;;  %s4726_s3 = sshll.u32 %s4844_s6, 4  ;;  %s5679_s7 = int_to_ptr.vmem [resolvable:$true] %s3492_s7  ;;  %s4727_s3 = int_to_ptr.vmem [resolvable:$false] %s4726_s3 }
0x1acd   : > { %s4722_s1 = scalar_lea.vmem %s5679_s7, 128  ;;  %s4728_s4 = scalar_lea.vmem %s4727_s3, 256 }
0x1ace   : > { %p4723_p13 = scmp.ne.s32.totalorder %s5679_s7, %s4722_s1  ;;  %p4729_p4 = scmp.lt.s32.totalorder %s5679_s7, %s4727_s3 }
0x1acf   : > { %p4730_p8 = scmp.lt.s32.totalorder %s4728_s4, %s4722_s1 }
0x1ad0   : > { %p4724_p6 = pnand %p4723_p13, %p5838_p3 }
0x1ad1   : > { %p4731_p0 = por %p4730_p8, %p4729_p4 }
0x1ad2   : > { %p4725_p9 = pneg %p4724_p6 }
0x1ad4   : > { %p4732_p5 = pnand %p4731_p0, %p4725_p9 }
0x1ae9   : > { %v2906_v62 = vpop.f32.mrb[24].mxu0 }
0x1aea   : > { %v2910_v63 = vadd.f32 %v2906_v62, %v2669_v43  ;;  %v4046_v2 = vpop.f32.mrb[25].mxu0  ;;  %v3759_v43 = vld [vmem:[%s5824_s17 + $0x70] sm:$0xff]  ;;  %v3394_v62 = vld [vmem:[#allocation19 + $0x8] sm:$0xff] }
0x1aeb   : > { %v4161_v44 = vpack.c.bf16 %v3760_v27, %v3759_v43  ;;  %v3395_v2 = vld [vmem:[#allocation19 + $0x10] sm:$0xff] }
0x1b46   : > { %v2997_v3 = vpop.xlane.xlu1 %2996 }
0x1b47   : > { %4378 = vrcp.f32 %v2997_v3  ;;  %v3396_v3 = vld [vmem:[#allocation19 + $0x18] sm:$0xff] }
0x1b4a   : > { %v3001_v4 = vpop.permute.xlu1 %3000 }
0x1b4b   : > { %4053 = vmatpush3.msra.mxu0 %v3001_v4  ;;  %v4167_v4 = vpack.c.bf16 %v3396_v3, %v3395_v2 }
0x1b4c   : > { %4145 = vmatprep.subr.bf16.mxu0 %v4830_v0 }
0x1b51   : > { %v4379_v5 = vpop.eup %4378 }
0x1b52   : > { %v2999_v6 = vmul.f32 %v4379_v5, %v4377_v60 }
0x1b54   : > { %4055 = vmatmul.mubr.msk.f32.vlgmr.msra.gmra.mrb[26].mxu0 %vm895_vm3, %v2999_v6 }
0x1b55   : > { %4070 = vmatprep.mubr.msk.f32.mxu0 %vm4831_vm0, %v4832_v1  ;;  %4147 = vmatpush3.bf16.msra.mxu0 %v4146_v20 }
0x1b56   : > { %4148 = vmatprep.subr.bf16.mxu0 %v4830_v0 }
0x1b59   : > { %4150 = vmatpush3.bf16.msra.mxu0 %v4149_v24 }
0x1b5a   : > { %4163 = vmatprep.subr.bf16.mxu0 %v4830_v0 }
0x1c27   : > { %v3072_v53 = vpop.f32.mrb[26].mxu0 }
0x1c28   : > { %v4056_v7 = vpop.f32.mrb[27].mxu0  ;;  %4060 = vmatmul.mubr.msk.f32.vlgmr.msra.gmra.mrb[28].mxu1 %vm895_vm3, %v3072_v53 }
0x1c29   : > { %4089 = vmatprep.mubr.msk.f32.mxu1 %vm4831_vm0, %v4832_v1 }
0x1cfb   : > { %v3147_v8 = vpop.f32.mrb[28].mxu1 }
0x1cfc   : > { %v3151_v9 = vadd.f32 %v3147_v8, %v2910_v63  ;;  %v4061_v10 = vpop.f32.mrb[29].mxu1  ;;  %v4164_v63 = vpack.c.bf16 %v3394_v62, %v3393_v61  ;;  %v3763_v8 = vld [vmem:[#allocation16 + $0x1] ss:$0 sm:$0xff] }
0x1cfd   : > { %v3764_v10 = vld [vmem:[#allocation17 + $0x1] ss:$0 sm:$0xff] }
0x1cfe   : > { %v3152_v11 = vadd.f32 %v3151_v9, %v5537_v50  ;;  %v3753_v50 = vld [vmem:[%s5824_s17 + $0x40] sm:$0xff] }
0x1cff   : > { %v4152_v28 = vpack.c.bf16 %v3754_v25, %v3753_v50 }
0x1d00   : > { %v3157_v12 = vsel %vm817_vm2, %v3152_v11, 0.0 }
0x1d01   : > { %3158 = vadd.xlane.f32.xlu1 %v3157_v12  ;;  %4153 = vmatpush3.bf16.msra.mxu1 %v4152_v28 }
0x1d02   : > { %4154 = vmatprep.subr.bf16.mxu1 %v4830_v0 }
0x1d05   : > { %4156 = vmatpush3.bf16.msra.mxu1 %v4155_v30 }
0x1d06   : > { %4157 = vmatprep.subr.bf16.mxu1 %v4830_v0 }
0x1d09   : > { %4159 = vmatpush3.bf16.msra.mxu1 %v4158_v33 }
0x1d0a   : > { %4160 = vmatprep.subr.bf16.mxu1 %v4830_v0 }
0x1d0d   : > { %4162 = vmatpush3.bf16.msra.mxu1 %v4161_v44 }
0x1d8e   : > { %v3159_v13 = vpop.xlane.xlu1 %3158 }
0x1d8f   : > { %v3160_v14 = vmul.f32 0.03125, %v3159_v13 }
0x1d91   : > { %v3161_v15 = vsub.f32 %v3152_v11, %v3160_v14 }
0x1d93   : > { %v3162_v16 = vmul.f32 %v3161_v15, %v3161_v15 }
0x1d95   : > { %v3163_v17 = vsel %vm817_vm2, %v3162_v16, 0.0 }
0x1d96   : > { %3164 = vadd.xlane.f32.xlu0 %v3163_v17 }
0x1e23   : > { %v3165_v34 = vpop.xlane.xlu0 %3164 }
0x1e24   : > { %v3166_v35 = vmul.f32 0.03125, %v3165_v34 }
0x1e26   : > { %v3167_v36 = vadd.f32 1e-05, %v3166_v35 }
0x1e28   : > { %4380 = vrsqrt.f32 %v3167_v36 }
0x1e32   : > { %v4381_v37 = vpop.eup %4380 }
0x1e33   : > { %v3169_v39 = vmul.f32 %v4381_v37, %v3161_v15 }
0x1e35   : > { %v3176_v41 = vmul.f32 %v3749_v38, %v3169_v39 }
0x1e37   : > { %v3183_v42 = vadd.f32 %v3750_v40, %v3176_v41 }
0x1e39   : > { %4071 = vmatmul.mubr.msk.f32.vlgmr.msra.gmra.mrb[28].mxu0 %vm817_vm2, %v3183_v42 }
0x1e3a   : > { %4100 = vmatprep.mubr.msk.f32.mxu0 %vm4831_vm0, %v4832_v1  ;;  %4165 = vmatpush3.bf16.msra.mxu0 %v4164_v63 }
0x1e3b   : > { %4166 = vmatprep.subr.bf16.mxu0 %v4830_v0  ;;  %v3765_v0 = vld [vmem:[#allocation20] ss:$0 sm:$0xff] }
0x1e3e   : > { %4168 = vmatpush3.bf16.msra.mxu0 %v4167_v4 }
0x1f0c   : > { %v3266_v46 = vpop.f32.mrb[28].mxu0 }
0x1f0d   : > { %v3267_v47 = vadd.f32 %v3751_v45, %v3266_v46  ;;  %v4072_v48 = vpop.f32.mrb[29].mxu0 }
0x1f0f   : > { %v3270_v49 = vmax.f32 %v3267_v47, 0.0 }
0x1f11   : > { %4090 = vmatmul.mubr.msk.f32.vlgmr.msra.gmra.mrb[30].mxu1 %vm732_vm1, %v3270_v49 }
0x1fe4   : > { %v3357_v52 = vpop.f32.mrb[30].mxu1 }
0x1fe5   : > { %v3358_v1 = vadd.f32 %v3761_v51, %v3357_v52  ;;  %v4091_v54 = vpop.f32.mrb[31].mxu1 }
0x1fe7   : > { %v3361_v55 = vadd.f32 %v3358_v1, %v3183_v42 }
0x1fe9   : > { %v3366_v56 = vsel %vm817_vm2, %v3361_v55, 0.0 }
0x1fea   : > { %3367 = vadd.xlane.f32.xlu0 %v3366_v56 }
0x2077   : > { %v3368_v57 = vpop.xlane.xlu0 %3367 }
0x2078   : > { %v3369_v58 = vmul.f32 0.03125, %v3368_v57 }
0x207a   : > { %v3370_v59 = vsub.f32 %v3361_v55, %v3369_v58 }
0x207c   : > { %v3371_v60 = vmul.f32 %v3370_v59, %v3370_v59 }
0x207e   : > { %v3372_v23 = vsel %vm817_vm2, %v3371_v60, 0.0 }
0x207f   : > { %3373 = vadd.xlane.f32.xlu0 %v3372_v23 }
0x210c   : > { %v3374_v5 = vpop.xlane.xlu0 %3373 }
0x210d   : > { %v3375_v6 = vmul.f32 0.03125, %v3374_v5 }
0x210f   : > { %v3376_v53 = vadd.f32 1e-05, %v3375_v6 }
0x2111   : > { %4382 = vrsqrt.f32 %v3376_v53 }
0x211b   : > { %v4383_v7 = vpop.eup %4382 }
0x211c   : > { %v3378_v9 = vmul.f32 %v4383_v7, %v3370_v59 }
0x211e   : > { %v3385_v11 = vmul.f32 %v3763_v8, %v3378_v9 }
0x2120   : > { %v3392_v12 = vadd.f32 %v3764_v10, %v3385_v11 }
0x2122   : > { %4101 = vmatmul.mubr.msk.f32.vlgmr.msra.gmra.mrb[30].mxu0 %vm817_vm2, %v3392_v12 }
0x21f5   : > { %v3473_v13 = vpop.f32.mrb[30].mxu0 }
0x21f6   : > { %v3474_v14 = vadd.f32 %v3765_v0, %v3473_v13  ;;  %v4102_v15 = vpop.f32.mrb[31].mxu0 }
0x21f8   : > { %3477 = vst.msk [vmem:[%s721_s5] sm:$0xff] %vm732_vm1, %v3474_v14 }
0x21f9   : > { %4735 = shalt.err (!%p4732_p5)
}
0x21fa   : > { %s4736_s21 = scalar_lea.hbm %s5677_s2, 128  ;;  %s4740_s28 = scalar_lea.hbm %s5837_s22, 256 }
0x21fb   : > { %p4737_p2 = scmp.ne.s32.totalorder %s5677_s2, %s4736_s21  ;;  %p4741_p1 = scmp.lt.u32.totalorder %s5677_s2, %s5837_s22 }
0x21fc   : > { %p4742_p11 = scmp.lt.u32.totalorder %s4740_s28, %s4736_s21  ;;  %p4744_p13 = scmp.lt.u32.totalorder %s4736_s21, %s5677_s2 }
0x21fd   : > { %p4738_p7 = pnand %p4737_p2, %p5838_p3 }
0x21fe   : > { %p4743_p12 = por %p4742_p11, %p4741_p1 }
0x21ff   : > { %p4739_p10 = pneg %p4738_p7 }
0x2200   : > { %p4745_p6 = por %p4744_p13, %p4743_p12 }
0x2202   : > { %p4746_p9 = pnand %p4745_p6, %p4739_p10 }
0x2204   : > { %4749 = shalt.err (!%p4746_p9)
}
0x2205   : > { %4215 = dma.vmem_to_hbm [thread:$0]  (%p5838_p3), %s5679_s7, 128, %s5677_s2, %s3479_s30  }
0x2206 PF: > { %s3504_s4 = sand.u32 1, %s4800_s24   ;;  %p5839_p4 = scmp.ne.s32.totalorder %s5802_s0, 0 }
0x2207   : > { %p5840_p8 = scmp.ge.s32.totalorder %s4812_s27, 2  ;;  %s3505_s1 = scalar_lea.sflag [#allocation4], %s3504_s4 }
0x2209   : > { %p4256_p0 = pnand %p5840_p8, %p5839_p4 }
0x220b   : > { %4795 = dma.done.wait (!%p4256_p0), %s3505_s1, 128  }
0x220c   : > { %4797 = vsyncadd (!%p4256_p0), %s3505_s1, 4294967168  ;;  %p36_p5 = scmp.ge.s32.totalorder %s5227_s18, 4   ;;  %s5841_s24 = smov %s4804_s25 }
0x220d   : > { %s5842_s25 = smov %s4808_s26  ;;  %s5843_s26 = smov %s5239_s29 }
0x220e   : > { %s5844_s27 = smov %s5227_s18  ;;  %38 = sbr.rel (!%p36_p5) target bundleno = 23 (0x17), region = 195 }
0x2215   :  { %3510 = vsyncpa [#allocation3], 1 }
0x2216   :  { %3512 = vsyncpa [#allocation3 + $0x1], 1 }
0x2217   :  { %3513 = vsyncpa [#allocation6], 1 }
0x2218   :  { %3514 = vsyncpa [#allocation9], 1 }
0x2219   :  { %3515 = vsyncpa [#allocation12], 1 }
0x221a   :  { %3516 = vsyncpa [#allocation15], 1 }
0x221b   :  { %3517 = vsyncpa [#allocation18], 1 }
0x221c   :  { %3518 = vsyncpa [#allocation21], 1 }
0x221d   :  { %3519 = vsyncpa [#allocation4], 1 }
0x221e   :  { %3521 = vsyncpa [#allocation4 + $0x1], 1 }

</bundles_post_ra>
